<compile_context>
chip_gen: v6e
topology: v6e:2x2x1
jax: 0.10.0
libtpu: 0.0.40
codegen_flags: <defaults>
</compile_context>

<pallas_src>
import math

import jax
import jax.numpy as jnp
import numpy as np
from jax.experimental import pallas as pl
from jax.experimental.pallas import tpu as pltpu

# ---------------- small ViT config (vit-base scaled down) ----------------
BATCH = 2
CHANNELS = 3
IMAGE = 32
PATCH = 16
NUM_PATCHES = (IMAGE // PATCH) ** 2          # 4
SEQ = NUM_PATCHES + 1                        # 5 = [CLS] + patches
SEQ_PAD = 8                                  # sublane-aligned rows per image
ROWS = BATCH * SEQ_PAD                       # 16: batch folded into rows
HIDDEN = 32
NUM_HEADS = 2
HEAD_DIM = HIDDEN // NUM_HEADS               # 16
INTERMEDIATE = 4 * HIDDEN                    # 128
NUM_LAYERS = 2
VOCAB = 48
VOCAB_PAD = 128                              # lane-dense classifier store
PATCH_DIM = CHANNELS * PATCH * PATCH         # 768
LN_EPS = 1e-12                               # ViTConfig default layer_norm_eps
NEG_INF = -1e30


# ---------------------------- kernel helpers ------------------------------
def _layernorm(x, gamma, beta, eps=LN_EPS):
    mean = jnp.mean(x, axis=-1, keepdims=True)
    var = jnp.mean((x - mean) ** 2, axis=-1, keepdims=True)
    return (x - mean) * jax.lax.rsqrt(var + eps) * gamma + beta


def _gelu(x):
    # TODO(synk): HF ViT uses exact (erf) GELU; tanh approximation used here
    # for guaranteed Mosaic lowering (the JAX reference below uses the same).
    return jax.nn.gelu(x, approximate=True)


# ------------------------------ fused kernel -------------------------------
def fused_vit_kernel(patches_ref, patch_w_ref, embed_bias_ref,
                     wqkv_ref, wo_ref, w1_ref, w2_ref, cls_w_ref,
                     ln_ref, bias_ref, out_ref):
    f32 = jnp.float32
    bf16 = jnp.bfloat16

    # Block-diagonal attention mask (batch folded into rows): query row q may
    # attend to key row k only if both belong to the same image and k is one
    # of that image's SEQ real rows. Built once per call (iota + compares).
    row = jax.lax.broadcasted_iota(jnp.int32, (ROWS, ROWS), 0)
    col = jax.lax.broadcasted_iota(jnp.int32, (ROWS, ROWS), 1)
    valid = None
    for b in range(BATCH):
        lo = b * SEQ_PAD
        blk = ((row >= lo) & (row < lo + SEQ_PAD)
               & (col >= lo) & (col < lo + SEQ))
        valid = blk if valid is None else (valid | blk)
    mask_bias = jnp.where(valid, 0.0, NEG_INF).astype(f32)

    # Patch / CLS embedding. CLS slot and pad rows of `patches` are all-zero,
    # so their projection is zero; embed_bias carries cls_token+pos[0] and
    # patch_bias+pos[1:] (zeros on the pad rows).
    x = (jnp.dot(patches_ref[...], patch_w_ref[...],
                 preferred_element_type=f32)
         + embed_bias_ref[...])                                    # (ROWS, H) f32

    for layer in range(NUM_LAYERS):                                # static unroll
        lr = 4 * layer            # row base into ln_ref / bias_ref

        # ---------------- attention ----------------
        h = _layernorm(x, ln_ref[lr:lr + 1, :], ln_ref[lr + 1:lr + 2, :])
        qkv = (jnp.dot(h.astype(bf16), wqkv_ref[layer],
                       preferred_element_type=f32)
               + bias_ref[lr:lr + 1, :3 * HIDDEN])                 # (ROWS, 3H) f32

        wo_l = wo_ref[layer]                                       # (H, H) bf16
        attn_out = bias_ref[lr + 1:lr + 2, :HIDDEN]                # bo, (1, H)
        for hd in range(NUM_HEADS):                                # static unroll
            o = hd * HEAD_DIM
            qh = qkv[:, o:o + HEAD_DIM].astype(bf16)
            kh = qkv[:, HIDDEN + o:HIDDEN + o + HEAD_DIM].astype(bf16)
            vh = qkv[:, 2 * HIDDEN + o:2 * HIDDEN + o + HEAD_DIM].astype(bf16)
            # scores = qh @ kh.T  (1/sqrt(head_dim) folded into wqkv host-side)
            scores = jax.lax.dot_general(
                qh, kh, (((1,), (1,)), ((), ())),
                preferred_element_type=f32) + mask_bias
            m = jnp.max(scores, axis=-1, keepdims=True)
            e = jnp.exp(scores - m)
            inv = pl.reciprocal(jnp.sum(e, axis=-1, keepdims=True), approx=True)
            p = (e * inv).astype(bf16)
            ctx = jnp.dot(p, vh, preferred_element_type=f32)       # (ROWS, HD)
            # Accumulate the attention output in registers (per-head context
            # hits the matching Wo row block; no VMEM scratch round-trip).
            attn_out = attn_out + jnp.dot(
                ctx.astype(bf16), wo_l[o:o + HEAD_DIM, :],
                preferred_element_type=f32)
        x = x + attn_out                                           # residual 1

        # ------------------ MLP --------------------
        h2 = _layernorm(x, ln_ref[lr + 2:lr + 3, :], ln_ref[lr + 3:lr + 4, :])
        mlp = _gelu(jnp.dot(h2.astype(bf16), w1_ref[layer],
                            preferred_element_type=f32)
                    + bias_ref[lr + 2:lr + 3, :])                  # (ROWS, I)
        x = x + (jnp.dot(mlp.astype(bf16), w2_ref[layer],
                         preferred_element_type=f32)
                 + bias_ref[lr + 3:lr + 4, :HIDDEN])               # residual 2

    # --------- final LN + classifier (full 128-lane unmasked store) ---------
    fr = 4 * NUM_LAYERS
    hf = _layernorm(x, ln_ref[fr:fr + 1, :], ln_ref[fr + 1:fr + 2, :])
    out_ref[...] = (jnp.dot(hf.astype(bf16), cls_w_ref[...],
                            preferred_element_type=f32)
                    + bias_ref[fr:fr + 1, :])                      # (ROWS, 128)


# --------------------------- pallas_call wrapper ----------------------------
def _vmem_spec():
    # Whole array resident in VMEM (no grid -> single invocation, no blocking).
    return pl.BlockSpec(memory_space=pltpu.MemorySpace.VMEM)


def vit_forward_fused(patch_rows, packed):
    args = (patch_rows, packed["patch_w"], packed["embed_bias"],
            packed["wqkv"], packed["wo"], packed["w1"], packed["w2"],
            packed["cls_w"], packed["ln_stack"], packed["bias_stack"])
    return pl.pallas_call(
        fused_vit_kernel,
        out_shape=jax.ShapeDtypeStruct((ROWS, VOCAB_PAD), jnp.float32),
        in_specs=[_vmem_spec() for _ in args],
        out_specs=_vmem_spec(),
    )(*args)


# ------------------------------ glue (JAX) ---------------------------------
def extract_patches(pixel_values):
    # NCHW -> (B, num_patches, C*P*P); flatten order (C, P, P) matches the
    # Conv2d(patch_size, stride=patch_size) weight flatten order.
    B, C, H, W = pixel_values.shape
    nh, nw = H // PATCH, W // PATCH
    x = pixel_values.reshape(B, C, nh, PATCH, nw, PATCH)
    x = x.transpose(0, 2, 4, 1, 3, 5)
    return x.reshape(B, nh * nw, C * PATCH * PATCH)


def _pad_lanes(v, width=VOCAB_PAD):
    v = jnp.asarray(v, jnp.float32).reshape(1, -1)
    return jnp.pad(v, ((0, 0), (0, width - v.shape[1])))


def pack_params(params):
    """One-time host-side packing (run OUTSIDE jit / the hot path):
    QKV fusion + attention-scale folding, per-layer weight stacking in bf16,
    and consolidation of every LN/bias vector into two small f32 tensors."""
    layers = params["layers"]
    scale = 1.0 / math.sqrt(HEAD_DIM)

    wqkv, wo, w1, w2 = [], [], [], []
    ln_rows, bias_rows = [], []
    for lp in layers:
        wqkv.append(jnp.concatenate(
            [lp["wq"] * scale, lp["wk"], lp["wv"]], axis=1))        # (H, 3H)
        wo.append(lp["wo"]); w1.append(lp["w1"]); w2.append(lp["w2"])
        ln_rows += [lp["ln1_g"], lp["ln1_b"], lp["ln2_g"], lp["ln2_b"]]
        bqkv = jnp.concatenate([lp["bq"] * scale, lp["bk"], lp["bv"]], axis=1)
        bias_rows += [_pad_lanes(bqkv), _pad_lanes(lp["bo"]),
                      _pad_lanes(lp["b1"]), _pad_lanes(lp["b2"])]
    ln_rows += [params["ln_f_g"], params["ln_f_b"]]
    bias_rows += [_pad_lanes(params["cls_b"])]

    per_img_bias = jnp.concatenate(
        [params["cls"] + params["pos"][0:1],
         params["patch_b"] + params["pos"][1:SEQ],
         jnp.zeros((SEQ_PAD - SEQ, HIDDEN), jnp.float32)], axis=0)  # (SEQ_PAD, H)
    embed_bias = jnp.tile(per_img_bias, (BATCH, 1))                 # (ROWS, H)

    cls_w = jnp.zeros((HIDDEN, VOCAB_PAD), jnp.float32)
    cls_w = cls_w.at[:, :VOCAB].set(params["cls_w"])

    bf16 = jnp.bfloat16
    return {
        "patch_w": params["patch_w"].astype(bf16),                  # (PD, H)
        "embed_bias": embed_bias,                                   # (ROWS, H) f32
        "wqkv": jnp.stack(wqkv).astype(bf16),                       # (L, H, 3H)
        "wo": jnp.stack(wo).astype(bf16),                           # (L, H, H)
        "w1": jnp.stack(w1).astype(bf16),                           # (L, H, I)
        "w2": jnp.stack(w2).astype(bf16),                           # (L, I, H)
        "cls_w": cls_w.astype(bf16),                                # (H, 128)
        "ln_stack": jnp.concatenate(ln_rows, axis=0),               # (4L+2, H) f32
        "bias_stack": jnp.concatenate(bias_rows, axis=0),           # (4L+1, 128) f32
    }


def forward(pixel_values, packed):
    patches = extract_patches(pixel_values)                         # (B, N, PD)
    # Per image: row 0 = CLS slot (zeros; embed_bias supplies cls+pos),
    # rows 1..N = patches, rows N+1..SEQ_PAD-1 = sublane padding.
    rows = jnp.pad(patches, ((0, 0), (1, SEQ_PAD - 1 - NUM_PATCHES), (0, 0)))
    rows = rows.reshape(ROWS, PATCH_DIM).astype(jnp.bfloat16)       # (16, 768)
    logits = vit_forward_fused(rows, packed)                        # (16, 128)
    logits = logits.reshape(BATCH, SEQ_PAD, VOCAB_PAD)
    return logits[:, :SEQ, :VOCAB]


# ------------------------- deterministic parameters ------------------------
def init_params(key):
    def nrm(k, shape, scale=0.02):
        return (scale * jax.random.normal(k, shape)).astype(jnp.float32)

    keys = iter(jax.random.split(key, 64))
    # conv weight in PyTorch layout (H_out, C, P, P), flattened to a matmul.
    conv_w = nrm(next(keys), (HIDDEN, CHANNELS, PATCH, PATCH))
    params = {
        "patch_w": conv_w.reshape(HIDDEN, PATCH_DIM).T,             # (PD, H)
        "patch_b": nrm(next(keys), (1, HIDDEN)),
        "cls":     nrm(next(keys), (1, HIDDEN)),
        "pos":     nrm(next(keys), (SEQ, HIDDEN)),
        "ln_f_g":  jnp.ones((1, HIDDEN), jnp.float32),
        "ln_f_b":  jnp.zeros((1, HIDDEN), jnp.float32),
        "cls_w":   nrm(next(keys), (HIDDEN, VOCAB)),                # stored (in, out)
        "cls_b":   nrm(next(keys), (1, VOCAB)),
        "layers":  [],
    }
    for _ in range(NUM_LAYERS):
        params["layers"].append({
            "ln1_g": jnp.ones((1, HIDDEN), jnp.float32),
            "ln1_b": jnp.zeros((1, HIDDEN), jnp.float32),
            "wq": nrm(next(keys), (HIDDEN, HIDDEN)), "bq": nrm(next(keys), (1, HIDDEN)),
            "wk": nrm(next(keys), (HIDDEN, HIDDEN)), "bk": nrm(next(keys), (1, HIDDEN)),
            "wv": nrm(next(keys), (HIDDEN, HIDDEN)), "bv": nrm(next(keys), (1, HIDDEN)),
            "wo": nrm(next(keys), (HIDDEN, HIDDEN)), "bo": nrm(next(keys), (1, HIDDEN)),
            "ln2_g": jnp.ones((1, HIDDEN), jnp.float32),
            "ln2_b": jnp.zeros((1, HIDDEN), jnp.float32),
            "w1": nrm(next(keys), (HIDDEN, INTERMEDIATE)), "b1": nrm(next(keys), (1, INTERMEDIATE)),
            "w2": nrm(next(keys), (INTERMEDIATE, HIDDEN)), "b2": nrm(next(keys), (1, HIDDEN)),
        })
    return params


# ----------------------------- plain-JAX reference --------------------------
def reference_forward(pixel_values, params):
    patches = extract_patches(pixel_values)
    emb = patches @ params["patch_w"] + params["patch_b"]
    cls = jnp.broadcast_to(params["cls"][None], (BATCH, 1, HIDDEN))
    x = jnp.concatenate([cls, emb], axis=1) + params["pos"][None]
    for lp in params["layers"]:
        h = _layernorm(x, lp["ln1_g"], lp["ln1_b"])
        q = h @ lp["wq"] + lp["bq"]
        k = h @ lp["wk"] + lp["bk"]
        v = h @ lp["wv"] + lp["bv"]
        q = q.reshape(BATCH, SEQ, NUM_HEADS, HEAD_DIM).transpose(0, 2, 1, 3)
        k = k.reshape(BATCH, SEQ, NUM_HEADS, HEAD_DIM).transpose(0, 2, 1, 3)
        v = v.reshape(BATCH, SEQ, NUM_HEADS, HEAD_DIM).transpose(0, 2, 1, 3)
        scores = jnp.einsum("bhqd,bhkd->bhqk", q, k) / math.sqrt(HEAD_DIM)
        p = jax.nn.softmax(scores, axis=-1)
        ctx = jnp.einsum("bhqk,bhkd->bhqd", p, v)
        ctx = ctx.transpose(0, 2, 1, 3).reshape(BATCH, SEQ, HIDDEN)
        x = x + (ctx @ lp["wo"] + lp["bo"])
        h2 = _layernorm(x, lp["ln2_g"], lp["ln2_b"])
        x = x + (_gelu(h2 @ lp["w1"] + lp["b1"]) @ lp["w2"] + lp["b2"])
    x = _layernorm(x, params["ln_f_g"], params["ln_f_b"])
    return x @ params["cls_w"] + params["cls_b"]


# ----------------------------------- main -----------------------------------
if __name__ == "__main__":
    key = jax.random.PRNGKey(0)
    pkey, ikey = jax.random.split(key)
    params = init_params(pkey)
    packed = pack_params(params)            # host-side, once, outside the jit
    pixel_values = jax.random.normal(
        ikey, (BATCH, CHANNELS, IMAGE, IMAGE), dtype=jnp.float32)

    fwd = jax.jit(forward)
    logits = jax.block_until_ready(fwd(pixel_values, packed))
    assert logits.shape == (BATCH, SEQ, VOCAB)

    ref = reference_forward(pixel_values, params)
    np.testing.assert_allclose(np.asarray(logits), np.asarray(ref),
                               rtol=1e-2, atol=1e-2)
    print("KERNEL_OK")
</pallas_src>

<mosaic_0001>
module attributes {stable_mosaic.version = 11 : i64} {
  func.func @fused_vit_kernel(%arg0: memref<16x768xbf16, #tpu.memory_space<vmem>>, %arg1: memref<768x32xbf16, #tpu.memory_space<vmem>>, %arg2: memref<16x32xf32, #tpu.memory_space<vmem>>, %arg3: memref<2x32x96xbf16, #tpu.memory_space<vmem>>, %arg4: memref<2x32x32xbf16, #tpu.memory_space<vmem>>, %arg5: memref<2x32x128xbf16, #tpu.memory_space<vmem>>, %arg6: memref<2x128x32xbf16, #tpu.memory_space<vmem>>, %arg7: memref<32x128xbf16, #tpu.memory_space<vmem>>, %arg8: memref<10x32xf32, #tpu.memory_space<vmem>>, %arg9: memref<9x128xf32, #tpu.memory_space<vmem>>, %arg10: memref<16x128xf32, #tpu.memory_space<vmem>>) attributes {dimension_semantics = [], scalar_prefetch = 0 : i64, scratch_operands = 0 : i64, tpu.core_type = #tpu.core_type<tc>} {
    %0 = tpu.iota {dimensions = array<i32: 0>} : vector<16x16xi32>
    %1 = tpu.iota {dimensions = array<i32: 1>} : vector<16x16xi32>
    %c0_i32 = arith.constant 0 : i32
    %2 = vector.broadcast %c0_i32 : i32 to vector<16x16xi32>
    %3 = arith.cmpi sge, %0, %2 : vector<16x16xi32>
    %c8_i32 = arith.constant 8 : i32
    %4 = vector.broadcast %c8_i32 : i32 to vector<16x16xi32>
    %5 = arith.cmpi slt, %0, %4 : vector<16x16xi32>
    %6 = arith.andi %3, %5 : vector<16x16xi1>
    %c0_i32_0 = arith.constant 0 : i32
    %7 = vector.broadcast %c0_i32_0 : i32 to vector<16x16xi32>
    %8 = arith.cmpi sge, %1, %7 : vector<16x16xi32>
    %9 = arith.andi %6, %8 : vector<16x16xi1>
    %c5_i32 = arith.constant 5 : i32
    %10 = vector.broadcast %c5_i32 : i32 to vector<16x16xi32>
    %11 = arith.cmpi slt, %1, %10 : vector<16x16xi32>
    %12 = arith.andi %9, %11 : vector<16x16xi1>
    %c8_i32_1 = arith.constant 8 : i32
    %13 = vector.broadcast %c8_i32_1 : i32 to vector<16x16xi32>
    %14 = arith.cmpi sge, %0, %13 : vector<16x16xi32>
    %c16_i32 = arith.constant 16 : i32
    %15 = vector.broadcast %c16_i32 : i32 to vector<16x16xi32>
    %16 = arith.cmpi slt, %0, %15 : vector<16x16xi32>
    %17 = arith.andi %14, %16 : vector<16x16xi1>
    %c8_i32_2 = arith.constant 8 : i32
    %18 = vector.broadcast %c8_i32_2 : i32 to vector<16x16xi32>
    %19 = arith.cmpi sge, %1, %18 : vector<16x16xi32>
    %20 = arith.andi %17, %19 : vector<16x16xi1>
    %c13_i32 = arith.constant 13 : i32
    %21 = vector.broadcast %c13_i32 : i32 to vector<16x16xi32>
    %22 = arith.cmpi slt, %1, %21 : vector<16x16xi32>
    %23 = arith.andi %20, %22 : vector<16x16xi1>
    %24 = arith.ori %12, %23 : vector<16x16xi1>
    %cst = arith.constant 0.000000e+00 : f32
    %cst_3 = arith.constant -1.000000e+30 : f32
    %25 = vector.broadcast %cst : f32 to vector<16x16xf32>
    %26 = vector.broadcast %cst_3 : f32 to vector<16x16xf32>
    %27 = arith.select %24, %25, %26 : vector<16x16xi1>, vector<16x16xf32>
    %c0 = arith.constant 0 : index
    %c0_4 = arith.constant 0 : index
    %28 = vector.load %arg0[%c0, %c0_4] : memref<16x768xbf16, #tpu.memory_space<vmem>>, vector<16x768xbf16>
    %c0_5 = arith.constant 0 : index
    %c0_6 = arith.constant 0 : index
    %29 = vector.load %arg1[%c0_5, %c0_6] : memref<768x32xbf16, #tpu.memory_space<vmem>>, vector<768x32xbf16>
    %cst_7 = arith.constant dense<0.000000e+00> : vector<16x32xf32>
    %30 = tpu.matmul %28, %29, %cst_7 {dimension_numbers = #tpu.dot_dimension_numbers<[1], [0], [0], [1], [0, 0, 1, 1], [], []>} : vector<16x768xbf16>, vector<768x32xbf16>, vector<16x32xf32> -> vector<16x32xf32>
    %c0_8 = arith.constant 0 : index
    %c0_9 = arith.constant 0 : index
    %31 = vector.load %arg2[%c0_8, %c0_9] : memref<16x32xf32, #tpu.memory_space<vmem>>, vector<16x32xf32>
    %32 = arith.addf %30, %31 : vector<16x32xf32>
    %c0_10 = arith.constant 0 : index
    %c0_11 = arith.constant 0 : index
    %33 = vector.load %arg8[%c0_10, %c0_11] : memref<10x32xf32, #tpu.memory_space<vmem>>, vector<1x32xf32>
    %c1 = arith.constant 1 : index
    %c0_12 = arith.constant 0 : index
    %34 = vector.load %arg8[%c1, %c0_12] : memref<10x32xf32, #tpu.memory_space<vmem>>, vector<1x32xf32>
    %cst_13 = arith.constant dense<0.000000e+00> : vector<16xf32>
    %35 = vector.multi_reduction <add>, %32, %cst_13 [1] : vector<16x32xf32> to vector<16xf32>
    %36 = vector.shape_cast %35 : vector<16xf32> to vector<16x1xf32>
    %cst_14 = arith.constant 3.200000e+01 : f32
    %37 = vector.broadcast %cst_14 : f32 to vector<16x1xf32>
    %38 = arith.divf %36, %37 : vector<16x1xf32>
    %39 = vector.broadcast %38 : vector<16x1xf32> to vector<16x32xf32>
    %40 = arith.subf %32, %39 : vector<16x32xf32>
    %41 = arith.mulf %40, %40 : vector<16x32xf32>
    %cst_15 = arith.constant dense<0.000000e+00> : vector<16xf32>
    %42 = vector.multi_reduction <add>, %41, %cst_15 [1] : vector<16x32xf32> to vector<16xf32>
    %43 = vector.shape_cast %42 : vector<16xf32> to vector<16x1xf32>
    %cst_16 = arith.constant 3.200000e+01 : f32
    %44 = vector.broadcast %cst_16 : f32 to vector<16x1xf32>
    %45 = arith.divf %43, %44 : vector<16x1xf32>
    %46 = vector.broadcast %38 : vector<16x1xf32> to vector<16x32xf32>
    %47 = arith.subf %32, %46 : vector<16x32xf32>
    %cst_17 = arith.constant 9.99999996E-13 : f32
    %48 = vector.broadcast %cst_17 : f32 to vector<16x1xf32>
    %49 = arith.addf %45, %48 : vector<16x1xf32>
    %50 = math.rsqrt %49 : vector<16x1xf32>
    %51 = vector.broadcast %50 : vector<16x1xf32> to vector<16x32xf32>
    %52 = arith.mulf %47, %51 : vector<16x32xf32>
    %53 = vector.broadcast %33 : vector<1x32xf32> to vector<16x32xf32>
    %54 = arith.mulf %52, %53 : vector<16x32xf32>
    %55 = vector.broadcast %34 : vector<1x32xf32> to vector<16x32xf32>
    %56 = arith.addf %54, %55 : vector<16x32xf32>
    %57 = arith.truncf %56 : vector<16x32xf32> to vector<16x32xbf16>
    %c0_18 = arith.constant 0 : index
    %c0_19 = arith.constant 0 : index
    %c0_20 = arith.constant 0 : index
    %58 = vector.load %arg3[%c0_18, %c0_19, %c0_20] : memref<2x32x96xbf16, #tpu.memory_space<vmem>>, vector<1x32x96xbf16>
    %59 = vector.shape_cast %58 : vector<1x32x96xbf16> to vector<32x96xbf16>
    %cst_21 = arith.constant dense<0.000000e+00> : vector<16x96xf32>
    %60 = tpu.matmul %57, %59, %cst_21 {dimension_numbers = #tpu.dot_dimension_numbers<[1], [0], [0], [1], [0, 0, 1, 1], [], []>} : vector<16x32xbf16>, vector<32x96xbf16>, vector<16x96xf32> -> vector<16x96xf32>
    %c0_22 = arith.constant 0 : index
    %c0_23 = arith.constant 0 : index
    %61 = vector.load %arg9[%c0_22, %c0_23] : memref<9x128xf32, #tpu.memory_space<vmem>>, vector<1x96xf32>
    %62 = vector.broadcast %61 : vector<1x96xf32> to vector<16x96xf32>
    %63 = arith.addf %60, %62 : vector<16x96xf32>
    %c0_24 = arith.constant 0 : index
    %c0_25 = arith.constant 0 : index
    %c0_26 = arith.constant 0 : index
    %64 = vector.load %arg4[%c0_24, %c0_25, %c0_26] : memref<2x32x32xbf16, #tpu.memory_space<vmem>>, vector<1x32x32xbf16>
    %65 = vector.shape_cast %64 : vector<1x32x32xbf16> to vector<32x32xbf16>
    %c1_27 = arith.constant 1 : index
    %c0_28 = arith.constant 0 : index
    %66 = vector.load %arg9[%c1_27, %c0_28] : memref<9x128xf32, #tpu.memory_space<vmem>>, vector<1x32xf32>
    %67 = vector.extract_strided_slice %63 {offsets = [0, 0], sizes = [16, 16], strides = [1, 1]} : vector<16x96xf32> to vector<16x16xf32>
    %68 = arith.truncf %67 : vector<16x16xf32> to vector<16x16xbf16>
    %69 = vector.extract_strided_slice %63 {offsets = [0, 32], sizes = [16, 16], strides = [1, 1]} : vector<16x96xf32> to vector<16x16xf32>
    %70 = arith.truncf %69 : vector<16x16xf32> to vector<16x16xbf16>
    %71 = vector.extract_strided_slice %63 {offsets = [0, 64], sizes = [16, 16], strides = [1, 1]} : vector<16x96xf32> to vector<16x16xf32>
    %72 = arith.truncf %71 : vector<16x16xf32> to vector<16x16xbf16>
    %cst_29 = arith.constant dense<0.000000e+00> : vector<16x16xf32>
    %73 = tpu.matmul %68, %70, %cst_29 {dimension_numbers = #tpu.dot_dimension_numbers<[1], [1], [0], [0], [0, 0, 1, 0], [], []>} : vector<16x16xbf16>, vector<16x16xbf16>, vector<16x16xf32> -> vector<16x16xf32>
    %74 = arith.addf %73, %27 : vector<16x16xf32>
    %cst_30 = arith.constant dense<0xFF800000> : vector<16xf32>
    %75 = vector.multi_reduction <maximumf>, %74, %cst_30 [1] : vector<16x16xf32> to vector<16xf32>
    %76 = vector.shape_cast %75 : vector<16xf32> to vector<16x1xf32>
    %77 = vector.broadcast %76 : vector<16x1xf32> to vector<16x16xf32>
    %78 = arith.subf %74, %77 : vector<16x16xf32>
    %79 = math.exp %78 : vector<16x16xf32>
    %cst_31 = arith.constant dense<0.000000e+00> : vector<16xf32>
    %80 = vector.multi_reduction <add>, %79, %cst_31 [1] : vector<16x16xf32> to vector<16xf32>
    %81 = vector.shape_cast %80 : vector<16xf32> to vector<16x1xf32>
    %82 = tpu.reciprocal %81 {approx = true} : vector<16x1xf32> -> vector<16x1xf32>
    %83 = vector.broadcast %82 : vector<16x1xf32> to vector<16x16xf32>
    %84 = arith.mulf %79, %83 : vector<16x16xf32>
    %85 = arith.truncf %84 : vector<16x16xf32> to vector<16x16xbf16>
    %cst_32 = arith.constant dense<0.000000e+00> : vector<16x16xf32>
    %86 = tpu.matmul %85, %72, %cst_32 {dimension_numbers = #tpu.dot_dimension_numbers<[1], [0], [0], [1], [0, 0, 1, 1], [], []>} : vector<16x16xbf16>, vector<16x16xbf16>, vector<16x16xf32> -> vector<16x16xf32>
    %87 = arith.truncf %86 : vector<16x16xf32> to vector<16x16xbf16>
    %88 = vector.extract_strided_slice %65 {offsets = [0, 0], sizes = [16, 32], strides = [1, 1]} : vector<32x32xbf16> to vector<16x32xbf16>
    %cst_33 = arith.constant dense<0.000000e+00> : vector<16x32xf32>
    %89 = tpu.matmul %87, %88, %cst_33 {dimension_numbers = #tpu.dot_dimension_numbers<[1], [0], [0], [1], [0, 0, 1, 1], [], []>} : vector<16x16xbf16>, vector<16x32xbf16>, vector<16x32xf32> -> vector<16x32xf32>
    %90 = vector.broadcast %66 : vector<1x32xf32> to vector<16x32xf32>
    %91 = arith.addf %90, %89 : vector<16x32xf32>
    %92 = vector.extract_strided_slice %63 {offsets = [0, 16], sizes = [16, 16], strides = [1, 1]} : vector<16x96xf32> to vector<16x16xf32>
    %93 = arith.truncf %92 : vector<16x16xf32> to vector<16x16xbf16>
    %94 = vector.extract_strided_slice %63 {offsets = [0, 48], sizes = [16, 16], strides = [1, 1]} : vector<16x96xf32> to vector<16x16xf32>
    %95 = arith.truncf %94 : vector<16x16xf32> to vector<16x16xbf16>
    %96 = vector.extract_strided_slice %63 {offsets = [0, 80], sizes = [16, 16], strides = [1, 1]} : vector<16x96xf32> to vector<16x16xf32>
    %97 = arith.truncf %96 : vector<16x16xf32> to vector<16x16xbf16>
    %cst_34 = arith.constant dense<0.000000e+00> : vector<16x16xf32>
    %98 = tpu.matmul %93, %95, %cst_34 {dimension_numbers = #tpu.dot_dimension_numbers<[1], [1], [0], [0], [0, 0, 1, 0], [], []>} : vector<16x16xbf16>, vector<16x16xbf16>, vector<16x16xf32> -> vector<16x16xf32>
    %99 = arith.addf %98, %27 : vector<16x16xf32>
    %cst_35 = arith.constant dense<0xFF800000> : vector<16xf32>
    %100 = vector.multi_reduction <maximumf>, %99, %cst_35 [1] : vector<16x16xf32> to vector<16xf32>
    %101 = vector.shape_cast %100 : vector<16xf32> to vector<16x1xf32>
    %102 = vector.broadcast %101 : vector<16x1xf32> to vector<16x16xf32>
    %103 = arith.subf %99, %102 : vector<16x16xf32>
    %104 = math.exp %103 : vector<16x16xf32>
    %cst_36 = arith.constant dense<0.000000e+00> : vector<16xf32>
    %105 = vector.multi_reduction <add>, %104, %cst_36 [1] : vector<16x16xf32> to vector<16xf32>
    %106 = vector.shape_cast %105 : vector<16xf32> to vector<16x1xf32>
    %107 = tpu.reciprocal %106 {approx = true} : vector<16x1xf32> -> vector<16x1xf32>
    %108 = vector.broadcast %107 : vector<16x1xf32> to vector<16x16xf32>
    %109 = arith.mulf %104, %108 : vector<16x16xf32>
    %110 = arith.truncf %109 : vector<16x16xf32> to vector<16x16xbf16>
    %cst_37 = arith.constant dense<0.000000e+00> : vector<16x16xf32>
    %111 = tpu.matmul %110, %97, %cst_37 {dimension_numbers = #tpu.dot_dimension_numbers<[1], [0], [0], [1], [0, 0, 1, 1], [], []>} : vector<16x16xbf16>, vector<16x16xbf16>, vector<16x16xf32> -> vector<16x16xf32>
    %112 = arith.truncf %111 : vector<16x16xf32> to vector<16x16xbf16>
    %113 = vector.extract_strided_slice %65 {offsets = [16, 0], sizes = [16, 32], strides = [1, 1]} : vector<32x32xbf16> to vector<16x32xbf16>
    %cst_38 = arith.constant dense<0.000000e+00> : vector<16x32xf32>
    %114 = tpu.matmul %112, %113, %cst_38 {dimension_numbers = #tpu.dot_dimension_numbers<[1], [0], [0], [1], [0, 0, 1, 1], [], []>} : vector<16x16xbf16>, vector<16x32xbf16>, vector<16x32xf32> -> vector<16x32xf32>
    %115 = arith.addf %91, %114 : vector<16x32xf32>
    %116 = arith.addf %32, %115 : vector<16x32xf32>
    %c2 = arith.constant 2 : index
    %c0_39 = arith.constant 0 : index
    %117 = vector.load %arg8[%c2, %c0_39] : memref<10x32xf32, #tpu.memory_space<vmem>>, vector<1x32xf32>
    %c3 = arith.constant 3 : index
    %c0_40 = arith.constant 0 : index
    %118 = vector.load %arg8[%c3, %c0_40] : memref<10x32xf32, #tpu.memory_space<vmem>>, vector<1x32xf32>
    %cst_41 = arith.constant dense<0.000000e+00> : vector<16xf32>
    %119 = vector.multi_reduction <add>, %116, %cst_41 [1] : vector<16x32xf32> to vector<16xf32>
    %120 = vector.shape_cast %119 : vector<16xf32> to vector<16x1xf32>
    %cst_42 = arith.constant 3.200000e+01 : f32
    %121 = vector.broadcast %cst_42 : f32 to vector<16x1xf32>
    %122 = arith.divf %120, %121 : vector<16x1xf32>
    %123 = vector.broadcast %122 : vector<16x1xf32> to vector<16x32xf32>
    %124 = arith.subf %116, %123 : vector<16x32xf32>
    %125 = arith.mulf %124, %124 : vector<16x32xf32>
    %cst_43 = arith.constant dense<0.000000e+00> : vector<16xf32>
    %126 = vector.multi_reduction <add>, %125, %cst_43 [1] : vector<16x32xf32> to vector<16xf32>
    %127 = vector.shape_cast %126 : vector<16xf32> to vector<16x1xf32>
    %cst_44 = arith.constant 3.200000e+01 : f32
    %128 = vector.broadcast %cst_44 : f32 to vector<16x1xf32>
    %129 = arith.divf %127, %128 : vector<16x1xf32>
    %130 = vector.broadcast %122 : vector<16x1xf32> to vector<16x32xf32>
    %131 = arith.subf %116, %130 : vector<16x32xf32>
    %cst_45 = arith.constant 9.99999996E-13 : f32
    %132 = vector.broadcast %cst_45 : f32 to vector<16x1xf32>
    %133 = arith.addf %129, %132 : vector<16x1xf32>
    %134 = math.rsqrt %133 : vector<16x1xf32>
    %135 = vector.broadcast %134 : vector<16x1xf32> to vector<16x32xf32>
    %136 = arith.mulf %131, %135 : vector<16x32xf32>
    %137 = vector.broadcast %117 : vector<1x32xf32> to vector<16x32xf32>
    %138 = arith.mulf %136, %137 : vector<16x32xf32>
    %139 = vector.broadcast %118 : vector<1x32xf32> to vector<16x32xf32>
    %140 = arith.addf %138, %139 : vector<16x32xf32>
    %141 = arith.truncf %140 : vector<16x32xf32> to vector<16x32xbf16>
    %c0_46 = arith.constant 0 : index
    %c0_47 = arith.constant 0 : index
    %c0_48 = arith.constant 0 : index
    %142 = vector.load %arg5[%c0_46, %c0_47, %c0_48] : memref<2x32x128xbf16, #tpu.memory_space<vmem>>, vector<1x32x128xbf16>
    %143 = vector.shape_cast %142 : vector<1x32x128xbf16> to vector<32x128xbf16>
    %cst_49 = arith.constant dense<0.000000e+00> : vector<16x128xf32>
    %144 = tpu.matmul %141, %143, %cst_49 {dimension_numbers = #tpu.dot_dimension_numbers<[1], [0], [0], [1], [0, 0, 1, 1], [], []>} : vector<16x32xbf16>, vector<32x128xbf16>, vector<16x128xf32> -> vector<16x128xf32>
    %c2_50 = arith.constant 2 : index
    %c0_51 = arith.constant 0 : index
    %145 = vector.load %arg9[%c2_50, %c0_51] : memref<9x128xf32, #tpu.memory_space<vmem>>, vector<1x128xf32>
    %146 = vector.broadcast %145 : vector<1x128xf32> to vector<16x128xf32>
    %147 = arith.addf %144, %146 : vector<16x128xf32>
    %148 = arith.mulf %147, %147 : vector<16x128xf32>
    %149 = arith.mulf %147, %148 : vector<16x128xf32>
    %cst_52 = arith.constant 4.471500e-02 : f32
    %150 = vector.broadcast %cst_52 : f32 to vector<16x128xf32>
    %151 = arith.mulf %150, %149 : vector<16x128xf32>
    %152 = arith.addf %147, %151 : vector<16x128xf32>
    %cst_53 = arith.constant 0.797884583 : f32
    %153 = vector.broadcast %cst_53 : f32 to vector<16x128xf32>
    %154 = arith.mulf %153, %152 : vector<16x128xf32>
    %155 = math.tanh %154 : vector<16x128xf32>
    %cst_54 = arith.constant 1.000000e+00 : f32
    %156 = vector.broadcast %cst_54 : f32 to vector<16x128xf32>
    %157 = arith.addf %156, %155 : vector<16x128xf32>
    %cst_55 = arith.constant 5.000000e-01 : f32
    %158 = vector.broadcast %cst_55 : f32 to vector<16x128xf32>
    %159 = arith.mulf %158, %157 : vector<16x128xf32>
    %160 = arith.mulf %147, %159 : vector<16x128xf32>
    %161 = arith.truncf %160 : vector<16x128xf32> to vector<16x128xbf16>
    %c0_56 = arith.constant 0 : index
    %c0_57 = arith.constant 0 : index
    %c0_58 = arith.constant 0 : index
    %162 = vector.load %arg6[%c0_56, %c0_57, %c0_58] : memref<2x128x32xbf16, #tpu.memory_space<vmem>>, vector<1x128x32xbf16>
    %163 = vector.shape_cast %162 : vector<1x128x32xbf16> to vector<128x32xbf16>
    %cst_59 = arith.constant dense<0.000000e+00> : vector<16x32xf32>
    %164 = tpu.matmul %161, %163, %cst_59 {dimension_numbers = #tpu.dot_dimension_numbers<[1], [0], [0], [1], [0, 0, 1, 1], [], []>} : vector<16x128xbf16>, vector<128x32xbf16>, vector<16x32xf32> -> vector<16x32xf32>
    %c3_60 = arith.constant 3 : index
    %c0_61 = arith.constant 0 : index
    %165 = vector.load %arg9[%c3_60, %c0_61] : memref<9x128xf32, #tpu.memory_space<vmem>>, vector<1x32xf32>
    %166 = vector.broadcast %165 : vector<1x32xf32> to vector<16x32xf32>
    %167 = arith.addf %164, %166 : vector<16x32xf32>
    %168 = arith.addf %116, %167 : vector<16x32xf32>
    %c4 = arith.constant 4 : index
    %c0_62 = arith.constant 0 : index
    %169 = vector.load %arg8[%c4, %c0_62] : memref<10x32xf32, #tpu.memory_space<vmem>>, vector<1x32xf32>
    %c5 = arith.constant 5 : index
    %c0_63 = arith.constant 0 : index
    %170 = vector.load %arg8[%c5, %c0_63] : memref<10x32xf32, #tpu.memory_space<vmem>>, vector<1x32xf32>
    %cst_64 = arith.constant dense<0.000000e+00> : vector<16xf32>
    %171 = vector.multi_reduction <add>, %168, %cst_64 [1] : vector<16x32xf32> to vector<16xf32>
    %172 = vector.shape_cast %171 : vector<16xf32> to vector<16x1xf32>
    %cst_65 = arith.constant 3.200000e+01 : f32
    %173 = vector.broadcast %cst_65 : f32 to vector<16x1xf32>
    %174 = arith.divf %172, %173 : vector<16x1xf32>
    %175 = vector.broadcast %174 : vector<16x1xf32> to vector<16x32xf32>
    %176 = arith.subf %168, %175 : vector<16x32xf32>
    %177 = arith.mulf %176, %176 : vector<16x32xf32>
    %cst_66 = arith.constant dense<0.000000e+00> : vector<16xf32>
    %178 = vector.multi_reduction <add>, %177, %cst_66 [1] : vector<16x32xf32> to vector<16xf32>
    %179 = vector.shape_cast %178 : vector<16xf32> to vector<16x1xf32>
    %cst_67 = arith.constant 3.200000e+01 : f32
    %180 = vector.broadcast %cst_67 : f32 to vector<16x1xf32>
    %181 = arith.divf %179, %180 : vector<16x1xf32>
    %182 = vector.broadcast %174 : vector<16x1xf32> to vector<16x32xf32>
    %183 = arith.subf %168, %182 : vector<16x32xf32>
    %cst_68 = arith.constant 9.99999996E-13 : f32
    %184 = vector.broadcast %cst_68 : f32 to vector<16x1xf32>
    %185 = arith.addf %181, %184 : vector<16x1xf32>
    %186 = math.rsqrt %185 : vector<16x1xf32>
    %187 = vector.broadcast %186 : vector<16x1xf32> to vector<16x32xf32>
    %188 = arith.mulf %183, %187 : vector<16x32xf32>
    %189 = vector.broadcast %169 : vector<1x32xf32> to vector<16x32xf32>
    %190 = arith.mulf %188, %189 : vector<16x32xf32>
    %191 = vector.broadcast %170 : vector<1x32xf32> to vector<16x32xf32>
    %192 = arith.addf %190, %191 : vector<16x32xf32>
    %193 = arith.truncf %192 : vector<16x32xf32> to vector<16x32xbf16>
    %c1_69 = arith.constant 1 : index
    %c0_70 = arith.constant 0 : index
    %c0_71 = arith.constant 0 : index
    %194 = vector.load %arg3[%c1_69, %c0_70, %c0_71] : memref<2x32x96xbf16, #tpu.memory_space<vmem>>, vector<1x32x96xbf16>
    %195 = vector.shape_cast %194 : vector<1x32x96xbf16> to vector<32x96xbf16>
    %cst_72 = arith.constant dense<0.000000e+00> : vector<16x96xf32>
    %196 = tpu.matmul %193, %195, %cst_72 {dimension_numbers = #tpu.dot_dimension_numbers<[1], [0], [0], [1], [0, 0, 1, 1], [], []>} : vector<16x32xbf16>, vector<32x96xbf16>, vector<16x96xf32> -> vector<16x96xf32>
    %c4_73 = arith.constant 4 : index
    %c0_74 = arith.constant 0 : index
    %197 = vector.load %arg9[%c4_73, %c0_74] : memref<9x128xf32, #tpu.memory_space<vmem>>, vector<1x96xf32>
    %198 = vector.broadcast %197 : vector<1x96xf32> to vector<16x96xf32>
    %199 = arith.addf %196, %198 : vector<16x96xf32>
    %c1_75 = arith.constant 1 : index
    %c0_76 = arith.constant 0 : index
    %c0_77 = arith.constant 0 : index
    %200 = vector.load %arg4[%c1_75, %c0_76, %c0_77] : memref<2x32x32xbf16, #tpu.memory_space<vmem>>, vector<1x32x32xbf16>
    %201 = vector.shape_cast %200 : vector<1x32x32xbf16> to vector<32x32xbf16>
    %c5_78 = arith.constant 5 : index
    %c0_79 = arith.constant 0 : index
    %202 = vector.load %arg9[%c5_78, %c0_79] : memref<9x128xf32, #tpu.memory_space<vmem>>, vector<1x32xf32>
    %203 = vector.extract_strided_slice %199 {offsets = [0, 0], sizes = [16, 16], strides = [1, 1]} : vector<16x96xf32> to vector<16x16xf32>
    %204 = arith.truncf %203 : vector<16x16xf32> to vector<16x16xbf16>
    %205 = vector.extract_strided_slice %199 {offsets = [0, 32], sizes = [16, 16], strides = [1, 1]} : vector<16x96xf32> to vector<16x16xf32>
    %206 = arith.truncf %205 : vector<16x16xf32> to vector<16x16xbf16>
    %207 = vector.extract_strided_slice %199 {offsets = [0, 64], sizes = [16, 16], strides = [1, 1]} : vector<16x96xf32> to vector<16x16xf32>
    %208 = arith.truncf %207 : vector<16x16xf32> to vector<16x16xbf16>
    %cst_80 = arith.constant dense<0.000000e+00> : vector<16x16xf32>
    %209 = tpu.matmul %204, %206, %cst_80 {dimension_numbers = #tpu.dot_dimension_numbers<[1], [1], [0], [0], [0, 0, 1, 0], [], []>} : vector<16x16xbf16>, vector<16x16xbf16>, vector<16x16xf32> -> vector<16x16xf32>
    %210 = arith.addf %209, %27 : vector<16x16xf32>
    %cst_81 = arith.constant dense<0xFF800000> : vector<16xf32>
    %211 = vector.multi_reduction <maximumf>, %210, %cst_81 [1] : vector<16x16xf32> to vector<16xf32>
    %212 = vector.shape_cast %211 : vector<16xf32> to vector<16x1xf32>
    %213 = vector.broadcast %212 : vector<16x1xf32> to vector<16x16xf32>
    %214 = arith.subf %210, %213 : vector<16x16xf32>
    %215 = math.exp %214 : vector<16x16xf32>
    %cst_82 = arith.constant dense<0.000000e+00> : vector<16xf32>
    %216 = vector.multi_reduction <add>, %215, %cst_82 [1] : vector<16x16xf32> to vector<16xf32>
    %217 = vector.shape_cast %216 : vector<16xf32> to vector<16x1xf32>
    %218 = tpu.reciprocal %217 {approx = true} : vector<16x1xf32> -> vector<16x1xf32>
    %219 = vector.broadcast %218 : vector<16x1xf32> to vector<16x16xf32>
    %220 = arith.mulf %215, %219 : vector<16x16xf32>
    %221 = arith.truncf %220 : vector<16x16xf32> to vector<16x16xbf16>
    %cst_83 = arith.constant dense<0.000000e+00> : vector<16x16xf32>
    %222 = tpu.matmul %221, %208, %cst_83 {dimension_numbers = #tpu.dot_dimension_numbers<[1], [0], [0], [1], [0, 0, 1, 1], [], []>} : vector<16x16xbf16>, vector<16x16xbf16>, vector<16x16xf32> -> vector<16x16xf32>
    %223 = arith.truncf %222 : vector<16x16xf32> to vector<16x16xbf16>
    %224 = vector.extract_strided_slice %201 {offsets = [0, 0], sizes = [16, 32], strides = [1, 1]} : vector<32x32xbf16> to vector<16x32xbf16>
    %cst_84 = arith.constant dense<0.000000e+00> : vector<16x32xf32>
    %225 = tpu.matmul %223, %224, %cst_84 {dimension_numbers = #tpu.dot_dimension_numbers<[1], [0], [0], [1], [0, 0, 1, 1], [], []>} : vector<16x16xbf16>, vector<16x32xbf16>, vector<16x32xf32> -> vector<16x32xf32>
    %226 = vector.broadcast %202 : vector<1x32xf32> to vector<16x32xf32>
    %227 = arith.addf %226, %225 : vector<16x32xf32>
    %228 = vector.extract_strided_slice %199 {offsets = [0, 16], sizes = [16, 16], strides = [1, 1]} : vector<16x96xf32> to vector<16x16xf32>
    %229 = arith.truncf %228 : vector<16x16xf32> to vector<16x16xbf16>
    %230 = vector.extract_strided_slice %199 {offsets = [0, 48], sizes = [16, 16], strides = [1, 1]} : vector<16x96xf32> to vector<16x16xf32>
    %231 = arith.truncf %230 : vector<16x16xf32> to vector<16x16xbf16>
    %232 = vector.extract_strided_slice %199 {offsets = [0, 80], sizes = [16, 16], strides = [1, 1]} : vector<16x96xf32> to vector<16x16xf32>
    %233 = arith.truncf %232 : vector<16x16xf32> to vector<16x16xbf16>
    %cst_85 = arith.constant dense<0.000000e+00> : vector<16x16xf32>
    %234 = tpu.matmul %229, %231, %cst_85 {dimension_numbers = #tpu.dot_dimension_numbers<[1], [1], [0], [0], [0, 0, 1, 0], [], []>} : vector<16x16xbf16>, vector<16x16xbf16>, vector<16x16xf32> -> vector<16x16xf32>
    %235 = arith.addf %234, %27 : vector<16x16xf32>
    %cst_86 = arith.constant dense<0xFF800000> : vector<16xf32>
    %236 = vector.multi_reduction <maximumf>, %235, %cst_86 [1] : vector<16x16xf32> to vector<16xf32>
    %237 = vector.shape_cast %236 : vector<16xf32> to vector<16x1xf32>
    %238 = vector.broadcast %237 : vector<16x1xf32> to vector<16x16xf32>
    %239 = arith.subf %235, %238 : vector<16x16xf32>
    %240 = math.exp %239 : vector<16x16xf32>
    %cst_87 = arith.constant dense<0.000000e+00> : vector<16xf32>
    %241 = vector.multi_reduction <add>, %240, %cst_87 [1] : vector<16x16xf32> to vector<16xf32>
    %242 = vector.shape_cast %241 : vector<16xf32> to vector<16x1xf32>
    %243 = tpu.reciprocal %242 {approx = true} : vector<16x1xf32> -> vector<16x1xf32>
    %244 = vector.broadcast %243 : vector<16x1xf32> to vector<16x16xf32>
    %245 = arith.mulf %240, %244 : vector<16x16xf32>
    %246 = arith.truncf %245 : vector<16x16xf32> to vector<16x16xbf16>
    %cst_88 = arith.constant dense<0.000000e+00> : vector<16x16xf32>
    %247 = tpu.matmul %246, %233, %cst_88 {dimension_numbers = #tpu.dot_dimension_numbers<[1], [0], [0], [1], [0, 0, 1, 1], [], []>} : vector<16x16xbf16>, vector<16x16xbf16>, vector<16x16xf32> -> vector<16x16xf32>
    %248 = arith.truncf %247 : vector<16x16xf32> to vector<16x16xbf16>
    %249 = vector.extract_strided_slice %201 {offsets = [16, 0], sizes = [16, 32], strides = [1, 1]} : vector<32x32xbf16> to vector<16x32xbf16>
    %cst_89 = arith.constant dense<0.000000e+00> : vector<16x32xf32>
    %250 = tpu.matmul %248, %249, %cst_89 {dimension_numbers = #tpu.dot_dimension_numbers<[1], [0], [0], [1], [0, 0, 1, 1], [], []>} : vector<16x16xbf16>, vector<16x32xbf16>, vector<16x32xf32> -> vector<16x32xf32>
    %251 = arith.addf %227, %250 : vector<16x32xf32>
    %252 = arith.addf %168, %251 : vector<16x32xf32>
    %c6 = arith.constant 6 : index
    %c0_90 = arith.constant 0 : index
    %253 = vector.load %arg8[%c6, %c0_90] : memref<10x32xf32, #tpu.memory_space<vmem>>, vector<1x32xf32>
    %c7 = arith.constant 7 : index
    %c0_91 = arith.constant 0 : index
    %254 = vector.load %arg8[%c7, %c0_91] : memref<10x32xf32, #tpu.memory_space<vmem>>, vector<1x32xf32>
    %cst_92 = arith.constant dense<0.000000e+00> : vector<16xf32>
    %255 = vector.multi_reduction <add>, %252, %cst_92 [1] : vector<16x32xf32> to vector<16xf32>
    %256 = vector.shape_cast %255 : vector<16xf32> to vector<16x1xf32>
    %cst_93 = arith.constant 3.200000e+01 : f32
    %257 = vector.broadcast %cst_93 : f32 to vector<16x1xf32>
    %258 = arith.divf %256, %257 : vector<16x1xf32>
    %259 = vector.broadcast %258 : vector<16x1xf32> to vector<16x32xf32>
    %260 = arith.subf %252, %259 : vector<16x32xf32>
    %261 = arith.mulf %260, %260 : vector<16x32xf32>
    %cst_94 = arith.constant dense<0.000000e+00> : vector<16xf32>
    %262 = vector.multi_reduction <add>, %261, %cst_94 [1] : vector<16x32xf32> to vector<16xf32>
    %263 = vector.shape_cast %262 : vector<16xf32> to vector<16x1xf32>
    %cst_95 = arith.constant 3.200000e+01 : f32
    %264 = vector.broadcast %cst_95 : f32 to vector<16x1xf32>
    %265 = arith.divf %263, %264 : vector<16x1xf32>
    %266 = vector.broadcast %258 : vector<16x1xf32> to vector<16x32xf32>
    %267 = arith.subf %252, %266 : vector<16x32xf32>
    %cst_96 = arith.constant 9.99999996E-13 : f32
    %268 = vector.broadcast %cst_96 : f32 to vector<16x1xf32>
    %269 = arith.addf %265, %268 : vector<16x1xf32>
    %270 = math.rsqrt %269 : vector<16x1xf32>
    %271 = vector.broadcast %270 : vector<16x1xf32> to vector<16x32xf32>
    %272 = arith.mulf %267, %271 : vector<16x32xf32>
    %273 = vector.broadcast %253 : vector<1x32xf32> to vector<16x32xf32>
    %274 = arith.mulf %272, %273 : vector<16x32xf32>
    %275 = vector.broadcast %254 : vector<1x32xf32> to vector<16x32xf32>
    %276 = arith.addf %274, %275 : vector<16x32xf32>
    %277 = arith.truncf %276 : vector<16x32xf32> to vector<16x32xbf16>
    %c1_97 = arith.constant 1 : index
    %c0_98 = arith.constant 0 : index
    %c0_99 = arith.constant 0 : index
    %278 = vector.load %arg5[%c1_97, %c0_98, %c0_99] : memref<2x32x128xbf16, #tpu.memory_space<vmem>>, vector<1x32x128xbf16>
    %279 = vector.shape_cast %278 : vector<1x32x128xbf16> to vector<32x128xbf16>
    %cst_100 = arith.constant dense<0.000000e+00> : vector<16x128xf32>
    %280 = tpu.matmul %277, %279, %cst_100 {dimension_numbers = #tpu.dot_dimension_numbers<[1], [0], [0], [1], [0, 0, 1, 1], [], []>} : vector<16x32xbf16>, vector<32x128xbf16>, vector<16x128xf32> -> vector<16x128xf32>
    %c6_101 = arith.constant 6 : index
    %c0_102 = arith.constant 0 : index
    %281 = vector.load %arg9[%c6_101, %c0_102] : memref<9x128xf32, #tpu.memory_space<vmem>>, vector<1x128xf32>
    %282 = vector.broadcast %281 : vector<1x128xf32> to vector<16x128xf32>
    %283 = arith.addf %280, %282 : vector<16x128xf32>
    %284 = arith.mulf %283, %283 : vector<16x128xf32>
    %285 = arith.mulf %283, %284 : vector<16x128xf32>
    %cst_103 = arith.constant 4.471500e-02 : f32
    %286 = vector.broadcast %cst_103 : f32 to vector<16x128xf32>
    %287 = arith.mulf %286, %285 : vector<16x128xf32>
    %288 = arith.addf %283, %287 : vector<16x128xf32>
    %cst_104 = arith.constant 0.797884583 : f32
    %289 = vector.broadcast %cst_104 : f32 to vector<16x128xf32>
    %290 = arith.mulf %289, %288 : vector<16x128xf32>
    %291 = math.tanh %290 : vector<16x128xf32>
    %cst_105 = arith.constant 1.000000e+00 : f32
    %292 = vector.broadcast %cst_105 : f32 to vector<16x128xf32>
    %293 = arith.addf %292, %291 : vector<16x128xf32>
    %cst_106 = arith.constant 5.000000e-01 : f32
    %294 = vector.broadcast %cst_106 : f32 to vector<16x128xf32>
    %295 = arith.mulf %294, %293 : vector<16x128xf32>
    %296 = arith.mulf %283, %295 : vector<16x128xf32>
    %297 = arith.truncf %296 : vector<16x128xf32> to vector<16x128xbf16>
    %c1_107 = arith.constant 1 : index
    %c0_108 = arith.constant 0 : index
    %c0_109 = arith.constant 0 : index
    %298 = vector.load %arg6[%c1_107, %c0_108, %c0_109] : memref<2x128x32xbf16, #tpu.memory_space<vmem>>, vector<1x128x32xbf16>
    %299 = vector.shape_cast %298 : vector<1x128x32xbf16> to vector<128x32xbf16>
    %cst_110 = arith.constant dense<0.000000e+00> : vector<16x32xf32>
    %300 = tpu.matmul %297, %299, %cst_110 {dimension_numbers = #tpu.dot_dimension_numbers<[1], [0], [0], [1], [0, 0, 1, 1], [], []>} : vector<16x128xbf16>, vector<128x32xbf16>, vector<16x32xf32> -> vector<16x32xf32>
    %c7_111 = arith.constant 7 : index
    %c0_112 = arith.constant 0 : index
    %301 = vector.load %arg9[%c7_111, %c0_112] : memref<9x128xf32, #tpu.memory_space<vmem>>, vector<1x32xf32>
    %302 = vector.broadcast %301 : vector<1x32xf32> to vector<16x32xf32>
    %303 = arith.addf %300, %302 : vector<16x32xf32>
    %304 = arith.addf %252, %303 : vector<16x32xf32>
    %c8 = arith.constant 8 : index
    %c0_113 = arith.constant 0 : index
    %305 = vector.load %arg8[%c8, %c0_113] : memref<10x32xf32, #tpu.memory_space<vmem>>, vector<1x32xf32>
    %c9 = arith.constant 9 : index
    %c0_114 = arith.constant 0 : index
    %306 = vector.load %arg8[%c9, %c0_114] : memref<10x32xf32, #tpu.memory_space<vmem>>, vector<1x32xf32>
    %cst_115 = arith.constant dense<0.000000e+00> : vector<16xf32>
    %307 = vector.multi_reduction <add>, %304, %cst_115 [1] : vector<16x32xf32> to vector<16xf32>
    %308 = vector.shape_cast %307 : vector<16xf32> to vector<16x1xf32>
    %cst_116 = arith.constant 3.200000e+01 : f32
    %309 = vector.broadcast %cst_116 : f32 to vector<16x1xf32>
    %310 = arith.divf %308, %309 : vector<16x1xf32>
    %311 = vector.broadcast %310 : vector<16x1xf32> to vector<16x32xf32>
    %312 = arith.subf %304, %311 : vector<16x32xf32>
    %313 = arith.mulf %312, %312 : vector<16x32xf32>
    %cst_117 = arith.constant dense<0.000000e+00> : vector<16xf32>
    %314 = vector.multi_reduction <add>, %313, %cst_117 [1] : vector<16x32xf32> to vector<16xf32>
    %315 = vector.shape_cast %314 : vector<16xf32> to vector<16x1xf32>
    %cst_118 = arith.constant 3.200000e+01 : f32
    %316 = vector.broadcast %cst_118 : f32 to vector<16x1xf32>
    %317 = arith.divf %315, %316 : vector<16x1xf32>
    %318 = vector.broadcast %310 : vector<16x1xf32> to vector<16x32xf32>
    %319 = arith.subf %304, %318 : vector<16x32xf32>
    %cst_119 = arith.constant 9.99999996E-13 : f32
    %320 = vector.broadcast %cst_119 : f32 to vector<16x1xf32>
    %321 = arith.addf %317, %320 : vector<16x1xf32>
    %322 = math.rsqrt %321 : vector<16x1xf32>
    %323 = vector.broadcast %322 : vector<16x1xf32> to vector<16x32xf32>
    %324 = arith.mulf %319, %323 : vector<16x32xf32>
    %325 = vector.broadcast %305 : vector<1x32xf32> to vector<16x32xf32>
    %326 = arith.mulf %324, %325 : vector<16x32xf32>
    %327 = vector.broadcast %306 : vector<1x32xf32> to vector<16x32xf32>
    %328 = arith.addf %326, %327 : vector<16x32xf32>
    %329 = arith.truncf %328 : vector<16x32xf32> to vector<16x32xbf16>
    %c0_120 = arith.constant 0 : index
    %c0_121 = arith.constant 0 : index
    %330 = vector.load %arg7[%c0_120, %c0_121] : memref<32x128xbf16, #tpu.memory_space<vmem>>, vector<32x128xbf16>
    %cst_122 = arith.constant dense<0.000000e+00> : vector<16x128xf32>
    %331 = tpu.matmul %329, %330, %cst_122 {dimension_numbers = #tpu.dot_dimension_numbers<[1], [0], [0], [1], [0, 0, 1, 1], [], []>} : vector<16x32xbf16>, vector<32x128xbf16>, vector<16x128xf32> -> vector<16x128xf32>
    %c8_123 = arith.constant 8 : index
    %c0_124 = arith.constant 0 : index
    %332 = vector.load %arg9[%c8_123, %c0_124] : memref<9x128xf32, #tpu.memory_space<vmem>>, vector<1x128xf32>
    %333 = vector.broadcast %332 : vector<1x128xf32> to vector<16x128xf32>
    %334 = arith.addf %331, %333 : vector<16x128xf32>
    %c0_125 = arith.constant 0 : index
    %c0_126 = arith.constant 0 : index
    %335 = vector.load %arg10[%c0_125, %c0_126] : memref<16x128xf32, #tpu.memory_space<vmem>>, vector<16x128xf32>
    tpu.vector_store %arg10[%c0_125, %c0_126], %334 {strides = array<i32>} : memref<16x128xf32, #tpu.memory_space<vmem>>, vector<16x128xf32>,
    return
  }
}

</mosaic_0001>

<bundles_post_ra>
// kernel: forward.1
= control target key start
LH: loop header
LB: loop body
LE: loop exit
PB: predicated region body
PF: predicated region fallthrough
CT: control target
= control target key end

     0   :  { %vm616_vm0 = vcmask 261120   ;;  %vm2716_vm1 = vmmov 0   ;;  %s2717_s12 = smov 96   ;;  %s2718_s13 = smov 80   ;;  %vm731_vm2 = vcmask 130048   ;;  %s3310_s1 = inlined_call_operand.vmem [shape: bf16[768,32], index: 1, kind: input, shape index: {}]   ;;  %s3311_s0 = inlined_call_operand.vmem [shape: bf16[16,768], index: 0, kind: input, shape index: {}]   ;;  %s3312_s2 = inlined_call_operand.vmem [shape: f32[16,32], index: 2, kind: input, shape index: {}]   ;;  %s3313_s3 = inlined_call_operand.vmem [shape: bf16[2,32,96], index: 3, kind: input, shape index: {}]   ;;  %s3314_s8 = inlined_call_operand.vmem [shape: f32[10,32], index: 8, kind: input, shape index: {}]   ;;  %s3315_s9 = inlined_call_operand.vmem [shape: f32[9,128], index: 9, kind: input, shape index: {}]   ;;  %s3316_s4 = inlined_call_operand.vmem [shape: bf16[2,32,32], index: 4, kind: input, shape index: {}]   ;;  %s3317_s5 = inlined_call_operand.vmem [shape: bf16[2,32,128], index: 5, kind: input, shape index: {}]   ;;  %s3318_s6 = inlined_call_operand.vmem [shape: bf16[2,128,32], index: 6, kind: input, shape index: {}]   ;;  %s3319_s7 = inlined_call_operand.vmem [shape: bf16[32,128], index: 7, kind: input, shape index: {}]   ;;  %s3320_s10 = inlined_call_operand.vmem [shape: f32[16,128], index: 10, kind: output, shape index: {}]  }
   0x1   :  { %v2568_v0 = vld [vmem:[%s3310_s1 + $0x78] sm:$0xff]   ;;  %v2572_v4 = vld [vmem:[%s3310_s1 + $0x70] sm:$0xff]   ;;  %v2576_v8 = vld [vmem:[%s3310_s1 + $0x68] sm:$0xff]   ;;  %s2719_s14 = smov 112   ;;  %s2721_s15 = smov 64  }
   0x2   :  { %v2569_v1 = vld [vmem:[%s3310_s1 + $0x38] sm:$0xff]   ;;  %2285 = vmatprep.subr.bf16.mxu0 %v2568_v0  ;;  %v2573_v5 = vld [vmem:[%s3310_s1 + $0x30] sm:$0xff]   ;;  %v2577_v9 = vld [vmem:[%s3310_s1 + $0x28] sm:$0xff]   ;;  %s2722_s18 = smov 48  }
   0x3   :  { %v2570_v2 = vld [vmem:[%s3310_s1 + $0xf8] sm:$0xff]   ;;  %2286 = vmatpush3.bf16.msra.mxu0 %v2569_v1  ;;  %v2574_v6 = vld [vmem:[%s3310_s1 + $0xf0] sm:$0xff]   ;;  %v2578_v10 = vld [vmem:[%s3310_s1 + $0xe8] sm:$0xff]  }
   0x4   :  { %v2571_v3 = vld [vmem:[%s3310_s1 + $0xb8] sm:$0xff]   ;;  %2307 = vmatprep.subr.bf16.mxu1 %v2570_v2  ;;  %2287 = vmatprep.subr.bf16.mxu0 %v2572_v4  ;;  %v2575_v7 = vld [vmem:[%s3310_s1 + $0xb0] sm:$0xff]   ;;  %v2579_v11 = vld [vmem:[%s3310_s1 + $0xa8] sm:$0xff]  }
   0x5   :  { %2308 = vmatpush3.bf16.msra.mxu1 %v2571_v3  ;;  %v2580_v12 = vld [vmem:[%s3310_s1 + $0x60] sm:$0xff]   ;;  %v2584_v16 = vld [vmem:[%s3310_s1 + $0x58] sm:$0xff]   ;;  %v2588_v20 = vld [vmem:[%s3310_s1 + $0x50] sm:$0xff]  }
   0x6   :  { %2309 = vmatprep.subr.bf16.mxu1 %v2574_v6  ;;  %v2581_v13 = vld [vmem:[%s3310_s1 + $0x20] sm:$0xff]   ;;  %v2585_v17 = vld [vmem:[%s3310_s1 + $0x18] sm:$0xff]   ;;  %v2589_v21 = vld [vmem:[%s3310_s1 + $0x10] sm:$0xff]  }
   0x7   :  { %2288 = vmatpush3.bf16.msra.mxu0 %v2573_v5  ;;  %v2582_v14 = vld [vmem:[%s3310_s1 + $0xe0] sm:$0xff]   ;;  %v2586_v18 = vld [vmem:[%s3310_s1 + $0xd8] sm:$0xff]   ;;  %v2590_v22 = vld [vmem:[%s3310_s1 + $0xd0] sm:$0xff]  }
   0x8   :  { %2289 = vmatprep.subr.bf16.mxu0 %v2576_v8  ;;  %v2583_v15 = vld [vmem:[%s3310_s1 + $0xa0] sm:$0xff]   ;;  %v2587_v19 = vld [vmem:[%s3310_s1 + $0x98] sm:$0xff]   ;;  %v2591_v23 = vld [vmem:[%s3310_s1 + $0x90] sm:$0xff]  }
   0x9   :  { %2310 = vmatpush3.bf16.msra.mxu1 %v2575_v7  ;;  %v2592_v24 = vld [vmem:[%s3310_s1 + $0x48] sm:$0xff]   ;;  %v2596_v28 = vld [vmem:[%s3310_s1 + $0x40] sm:$0xff]   ;;  %v2603_v34 = vld [vmem:[%s3310_s1 + $0x178] sm:$0xff]  }
   0xa   :  { %2311 = vmatprep.subr.bf16.mxu1 %v2578_v10  ;;  %v2593_v25 = vld [vmem:[%s3310_s1 + $0x8] sm:$0xff]   ;;  %v2597_v29 = vld [vmem:[%s3310_s1] sm:$0xff]   ;;  %v2607_v37 = vld [vmem:[%s3310_s1 + $0x138] sm:$0xff]  }
   0xb   :  { %2290 = vmatpush3.bf16.msra.mxu0 %v2577_v9  ;;  %v2594_v26 = vld [vmem:[%s3310_s1 + $0xc8] sm:$0xff]   ;;  %v2598_v30 = vld [vmem:[%s3310_s1 + $0xc0] sm:$0xff]   ;;  %v2608_v38 = vld [vmem:[%s3310_s1 + $0x170] sm:$0xff]  }
   0xc   :  { %2291 = vmatprep.subr.bf16.mxu0 %v2580_v12  ;;  %v2595_v27 = vld [vmem:[%s3310_s1 + $0x88] sm:$0xff]   ;;  %v2599_v31 = vld [vmem:[%s3311_s0] ss:$24 sps:$4 sm:$0xff]   ;;  %v2601_v32 = vld [vmem:[%s3311_s0 + $0x4] ss:$24 sps:$4 sm:$0xff]  }
   0xd   :  { %2312 = vmatpush3.bf16.msra.mxu1 %v2579_v11  ;;  %v2602_v33 = vld [vmem:[%s3310_s1 + $0x80] sm:$0xff]   ;;  %523 = vmatprep.mubr.bf16.mxu0 %v2601_v32  ;;  %v2609_v39 = vld [vmem:[%s3310_s1 + $0x130] sm:$0xff]   ;;  %v2610_v40 = vld [vmem:[%s3310_s1 + $0x168] sm:$0xff]  }
   0xe   :  { %2313 = vmatprep.subr.bf16.mxu1 %v2582_v14  ;;  %v2604_v35 = vld [vmem:[%s3311_s0 + $0x8] ss:$24 sps:$4 sm:$0xff]   ;;  %v2606_v36 = vld [vmem:[%s3311_s0 + $0xc] ss:$24 sps:$4 sm:$0xff]   ;;  %v2614_v44 = vld [vmem:[%s3310_s1 + $0x158] sm:$0xff]  }
   0xf   :  { %2292 = vmatpush3.bf16.msra.mxu0 %v2581_v13  ;;  %564 = vmatprep.mubr.bf16.mxu1 %v2606_v36  ;;  %v2611_v41 = vld [vmem:[%s3310_s1 + $0x128] sm:$0xff]   ;;  %v2612_v42 = vld [vmem:[%s3310_s1 + $0x160] sm:$0xff]   ;;  %v2615_v45 = vld [vmem:[%s3310_s1 + $0x118] sm:$0xff]  }
  0x10   :  { %2293 = vmatprep.subr.bf16.mxu0 %v2584_v16  ;;  %v2613_v43 = vld [vmem:[%s3310_s1 + $0x120] sm:$0xff]   ;;  %v2616_v46 = vld [vmem:[%s3310_s1 + $0x150] sm:$0xff]   ;;  %v2618_v49 = vld [vmem:[%s3310_s1 + $0x148] sm:$0xff]  }
  0x11   :  { %2314 = vmatpush3.bf16.msra.mxu1 %v2583_v15  ;;  %v2624_v47 = vld [vmem:[%s3311_s0 + $0x14] ss:$24 sps:$4 sm:$0xff]   ;;  %v2620_v51 = vld [vmem:[%s3310_s1 + $0x140] sm:$0xff]   ;;  %v2622_v53 = vld [vmem:[%s3311_s0 + $0x10] ss:$24 sps:$4 sm:$0xff]  }
  0x12   :  { %2315 = vmatprep.subr.bf16.mxu1 %v2586_v18  ;;  %v2617_v48 = vld [vmem:[%s3310_s1 + $0x110] sm:$0xff]   ;;  %v2619_v50 = vld [vmem:[%s3310_s1 + $0x108] sm:$0xff]   ;;  %v2621_v52 = vld [vmem:[%s3310_s1 + $0x100] sm:$0xff]  }
  0x13   :  { %2294 = vmatpush3.bf16.msra.mxu0 %v2585_v17  ;;  %v171_v60 = vld [vmem:[%s3312_s2] sm:$0xff]  ;;  %v172_v2 = vld [vmem:[%s3312_s2 + $0x8] sm:$0xff] }
  0x14   :  { %2295 = vmatprep.subr.bf16.mxu0 %v2588_v20 }
  0x15   :  { %2316 = vmatpush3.bf16.msra.mxu1 %v2587_v19 }
  0x16   :  { %2317 = vmatprep.subr.bf16.mxu1 %v2590_v22 }
  0x17   :  { %2296 = vmatpush3.bf16.msra.mxu0 %v2589_v21 }
  0x18   :  { %2297 = vmatprep.subr.bf16.mxu0 %v2592_v24 }
  0x19   :  { %2318 = vmatpush3.bf16.msra.mxu1 %v2591_v23 }
  0x1a   :  { %2319 = vmatprep.subr.bf16.mxu1 %v2594_v26 }
  0x1b   :  { %2298 = vmatpush3.bf16.msra.mxu0 %v2593_v25 }
  0x1c   :  { %2299 = vmatprep.subr.bf16.mxu0 %v2596_v28  ;;  %v2625_v28 = vld [vmem:[%s3313_s3 + $0x8] sm:$0xff]  }
  0x1d   :  { %2320 = vmatpush3.bf16.msra.mxu1 %v2595_v27 }
  0x1e   :  { %2321 = vmatprep.subr.bf16.mxu1 %v2598_v30  ;;  %v2626_v30 = vld [vmem:[%s3313_s3] sm:$0xff]  }
  0x1f   :  { %2300 = vmatpush3.bf16.msra.mxu0 %v2597_v29  ;;  %v2715_v29 = vmov 0.0  }
  0x20   :  { %2329 = vmatprep.subr.bf16.mxu0 %v2603_v34 }
  0x21   :  { %2322 = vmatpush3.bf16.msra.mxu1 %v2602_v33 }
  0x22   :  { %524 = vmatmul.mubr.bf16.vlgmr.msra.gmra.mxu0 %v2599_v31  ;;  %2408 = vmatprep.subr.bf16.mxu1 %v2715_v29 }
  0x23   :  { %2330 = vmatpush3.bf16.msra.mxu0 %v2607_v37  ;;  %605 = vmatprep.mubr.bf16.mxu0 %v2624_v47 }
  0x24   :  { %565 = vmatmul.mubr.bf16.vlgmr.msra.gmra.mxu1 %v2604_v35  ;;  %2331 = vmatprep.subr.bf16.mxu0 %v2608_v38 }
  0x25   :  { %2409 = vmatpush3.bf16.msra.mxu1 %v2625_v28  ;;  %2412 = vmatprep.mubr.msk.bf16.mxu1 %vm2716_vm1, %v2715_v29 }
  0x26   :  { %2410 = vmatprep.subr.bf16.mxu1 %v2715_v29 }
  0x27   :  { %2332 = vmatpush3.bf16.msra.mxu0 %v2609_v39  ;;  %v2191_v39 = vld [vmem:[%s3314_s8] ss:$0 sm:$0xff] }
  0x28   :  { %2333 = vmatprep.subr.bf16.mxu0 %v2610_v40 }
  0x29   :  { %2411 = vmatpush3.bf16.msra.mxu1 %v2626_v30 }
  0x2a   :  { %2416 = vmatprep.subr.bf16.mxu1 %v2715_v29 }
  0x2b   :  { %2334 = vmatpush3.bf16.msra.mxu0 %v2611_v41 }
  0x2c   :  { %2335 = vmatprep.subr.bf16.mxu0 %v2612_v42 }
  0x2f   :  { %2336 = vmatpush3.bf16.msra.mxu0 %v2613_v43  ;;  %v2192_v43 = vld [vmem:[%s3314_s8 + $0x1] ss:$0 sm:$0xff] }
  0x30   :  { %2337 = vmatprep.subr.bf16.mxu0 %v2614_v44 }
  0x33   :  { %2338 = vmatpush3.bf16.msra.mxu0 %v2615_v45 }
  0x34   :  { %2339 = vmatprep.subr.bf16.mxu0 %v2616_v46 }
  0x37   :  { %2340 = vmatpush3.bf16.msra.mxu0 %v2617_v48 }
  0x38   :  { %2341 = vmatprep.subr.bf16.mxu0 %v2618_v49  ;;  %v2193_v49 = vld [vmem:[%s3315_s9] ss:$0 sm:$0xff] }
  0x3b   :  { %2342 = vmatpush3.bf16.msra.mxu0 %v2619_v50 }
  0x3c   :  { %2343 = vmatprep.subr.bf16.mxu0 %v2620_v51 }
  0x3f   :  { %2344 = vmatpush3.bf16.msra.mxu0 %v2621_v52 }
  0x40   :  { %2446 = vmatprep.subr.bf16.mxu0 %v2715_v29 }
  0x42   :  { %606 = vmatmul.mubr.bf16.vlgmr.msra.gmra.mxu0 %v2622_v53 }
  0x43   :  { %2448 = vmatprep.mubr.msk.bf16.mxu0 %vm2716_vm1, %v2715_v29 }
  0xe2   :  { %v2301_v54 = vpop.f32.mrf.mxu0 }
  0xe4   :  { %v2302_v55 = vpop.f32.mrf.mxu0  ;;  %v2323_v56 = vpop.f32.mrf.mxu1 }
  0xe5   :  { %v2303_v59 = vadd.f32 %v2302_v55, %v2301_v54 }
  0xe6   :  { %v2304_v57 = vpop.f32.mrf.mxu0  ;;  %v2324_v58 = vpop.f32.mrf.mxu1 }
  0xe7   :  { %v526_v63 = vadd.f32 %v2303_v59, %v171_v60  ;;  %v2325_v0 = vadd.f32 %v2324_v58, %v2323_v56  ;;  %v39_v58 = vlaneseq  ;;  %v2720_v60 = vmov -1e+30  }
  0xe8   :  { %v2305_v61 = vpop.f32.mrf.mxu0  ;;  %v2326_v62 = vpop.f32.mrf.mxu1 }
  0xe9   :  { %v2306_v1 = vadd.f32 %v2305_v61, %v2304_v57  ;;  %v567_v6 = vadd.f32 %v2325_v0, %v526_v63  ;;  %v40_v59 = vand.u32 127, %v39_v58 }
  0xea   :  { %v2327_v3 = vpop.f32.mrf.mxu1 }
  0xeb   :  { %v529_v7 = vadd.f32 %v2306_v1, %v172_v2  ;;  %v2328_v8 = vadd.f32 %v2327_v3, %v2326_v62  ;;  %vm50_vm3 = vcmp.lt.s32.totalorder %v40_v59, 5  ;;  %vm59_vm4 = vcmp.ge.s32.totalorder %v40_v59, 8 }
  0xec   :  { %vm62_vm5 = vcmp.lt.s32.totalorder %v40_v59, 13  ;;  %v2998_v61 = vsel %vm50_vm3, 0.0, %v2720_v60 }
  0xed   :  { %v570_v13 = vadd.f32 %v2328_v8, %v529_v7  ;;  %vm64_vm6 = vmand %vm59_vm4, %vm62_vm5 }
  0xee   :  { %v3001_v1 = vsel %vm64_vm6, 0.0, %v2720_v60 }
 0x102   :  { %v2345_v4 = vpop.f32.mrf.mxu0 }
 0x104   :  { %v2346_v5 = vpop.f32.mrf.mxu0 }
 0x105   :  { %v2347_v9 = vadd.f32 %v2346_v5, %v2345_v4 }
 0x106   :  { %v2348_v10 = vpop.f32.mrf.mxu0 }
 0x107   :  { %v2946_v11 = vadd.f32 %v2347_v9, %v567_v6 }
 0x108   :  { %v2349_v12 = vpop.f32.mrf.mxu0 }
 0x109   :  { %v2350_v14 = vadd.f32 %v2349_v12, %v2348_v10  ;;  %v617_v15 = vsel %vm616_vm0, %v2946_v11, 0.0 }
 0x10a   :  { %618 = vadd.xlane.f32.xlu0 %v617_v15 }
 0x10b   :  { %v2950_v16 = vadd.f32 %v2350_v14, %v570_v13 }
 0x10d   :  { %v620_v17 = vsel %vm616_vm0, %v2950_v16, 0.0 }
 0x10e   :  { %621 = vadd.xlane.f32.xlu0 %v620_v17 }
 0x193   :  { %v619_v18 = vpop.xlane.xlu0 %618 }
 0x194   :  { %v624_v19 = vmul.f32 0.03125, %v619_v18 }
 0x196   :  { %v626_v20 = vsub.f32 %v2946_v11, %v624_v19 }
 0x197   :  { %v622_v21 = vpop.xlane.xlu0 %621 }
 0x198   :  { %v625_v22 = vmul.f32 0.03125, %v622_v21  ;;  %v628_v23 = vmul.f32 %v626_v20, %v626_v20 }
 0x19a   :  { %v627_v24 = vsub.f32 %v2950_v16, %v625_v22  ;;  %v630_v25 = vsel %vm616_vm0, %v628_v23, 0.0 }
 0x19b   :  { %631 = vadd.xlane.f32.xlu1 %v630_v25 }
 0x19c   :  { %v629_v26 = vmul.f32 %v627_v24, %v627_v24 }
 0x19e   :  { %v633_v27 = vsel %vm616_vm0, %v629_v26, 0.0 }
 0x19f   :  { %634 = vadd.xlane.f32.xlu1 %v633_v27  ;;  %v2627_v27 = vld [vmem:[%s3316_s4] sm:$0xff]  }
 0x224   :  { %v632_v31 = vpop.xlane.xlu1 %631 }
 0x225   :  { %v636_v32 = vmul.f32 0.03125, %v632_v31 }
 0x227   :  { %v638_v33 = vadd.f32 1e-12, %v636_v32 }
 0x228   :  { %v635_v34 = vpop.xlane.xlu1 %634 }
 0x229   :  { %2655 = vrsqrt.f32 %v638_v33  ;;  %v637_v35 = vmul.f32 0.03125, %v635_v34 }
 0x22b   :  { %v639_v36 = vadd.f32 1e-12, %v637_v35 }
 0x22d   :  { %2657 = vrsqrt.f32 %v639_v36 }
 0x236   :  { %v2656_v37 = vpop.eup %2655 }
 0x237   :  { %v642_v38 = vmul.f32 %v2656_v37, %v626_v20 }
 0x239   :  { %v648_v42 = vmul.f32 %v2191_v39, %v642_v38 }
 0x23a   :  { %v2658_v40 = vpop.eup %2657 }
 0x23b   :  { %v643_v41 = vmul.f32 %v2658_v40, %v627_v24  ;;  %v654_v45 = vadd.f32 %v2192_v43, %v648_v42 }
 0x23d   :  { %v649_v44 = vmul.f32 %v2191_v39, %v643_v41 }
 0x23f   :  { %v655_v46 = vadd.f32 %v2192_v43, %v649_v44 }
 0x241   :  { %v656_v47 = vpack.c.bf16 %v655_v46, %v654_v45 }
 0x243   :  { %2413 = vmatmul.mubr.msk.bf16.vlgmr.msra.gmra.mxu1 %vm616_vm0, %v656_v47 }
 0x244   :  { %2418 = vmatprep.mubr.msk.bf16.mxu1 %vm2716_vm1, %v2715_v29 }
 0x303   :  { %v715_v48 = vpop.f32.mrf.mxu1 }
 0x304   :  { %v716_v52 = vadd.f32 %v2193_v49, %v715_v48 }
 0x305   :  { %v2414_v50 = vpop.f32.mrf.mxu1 }
 0x307   :  { %v718_v51 = vpop.f32.mrf.mxu1 }
 0x308   :  { %v719_v53 = vadd.f32 %v2193_v49, %v718_v51 }
 0x309   :  { %v2415_v54 = vpop.f32.mrf.mxu1 }
 0x30a   :  { %v2984_v55 = vpack.c.bf16 %v719_v53, %v716_v52 }
 0x30c   :  { %729 = vrot.lane.b32.xlu0 %v2984_v55, %s2717_s12 }
 0x310   :  { %908 = vrot.lane.b32.xlu0 %v2984_v55, %s2718_s13 }
 0x314   :  { %906 = vrot.lane.b32.xlu0 %v2984_v55, %s2719_s14 }
 0x37e   :  { %v730_v56 = vpop.permute.xlu0 %729 }
 0x37f   :  { %v736_v57 = vsel %vm731_vm2, %v730_v56, 0 }
 0x380   :  { %2417 = vmatpush3.bf16.xpose.msra.mxu1 %v736_v57 }
 0x381   :  { %2422 = vmatprep.subr.bf16.mxu1 %v2715_v29 }
 0x382   :  { %v909_v31 = vpop.permute.xlu0 %908 }
 0x383   :  { %v914_v35 = vsel %vm731_vm2, %v909_v31, 0 }
 0x386   :  { %v907_v36 = vpop.permute.xlu0 %906 }
 0x387   :  { %2419 = vmatmul.mubr.msk.bf16.vlgmr.msra.gmra.mxu1 %vm731_vm2, %v2984_v55 }
 0x388   :  { %2424 = vmatprep.mubr.msk.bf16.mxu1 %vm2716_vm1, %v2715_v29 }
 0x447   :  { %v772_v62 = vpop.f32.mrf.mxu1 }
 0x448   :  { %v773_v63 = vadd.f32 %v772_v62, %v2998_v61 }
 0x449   :  { %v2420_v0 = vpop.f32.mrf.mxu1 }
 0x44a   :  { %v779_v2 = vsel %vm731_vm2, %v773_v63, -inf }
 0x44b   :  { %780 = vmax.xlane.f32.xlu1 %v779_v2  ;;  %v775_v3 = vpop.f32.mrf.mxu1 }
 0x44c   :  { %v776_v4 = vadd.f32 %v775_v3, %v3001_v1 }
 0x44d   :  { %v2421_v5 = vpop.f32.mrf.mxu1 }
 0x44e   :  { %v782_v6 = vsel %vm731_vm2, %v776_v4, -inf }
 0x44f   :  { %783 = vmax.xlane.f32.xlu1 %v782_v6 }
 0x4d4   :  { %v781_v7 = vpop.xlane.xlu1 %780 }
 0x4d5   :  { %v785_v8 = vsub.f32 %v773_v63, %v781_v7 }
 0x4d7   :  { %v787_v9 = vmul.f32 1.442695, %v785_v8 }
 0x4d8   :  { %v784_v10 = vpop.xlane.xlu1 %783 }
 0x4d9   :  { %2659 = vpow2.f32 %v787_v9  ;;  %v786_v12 = vsub.f32 %v776_v4, %v784_v10 }
 0x4db   :  { %v789_v13 = vmul.f32 1.442695, %v786_v12  ;;  %v2201_v12 = vld [vmem:[%s3315_s9 + $0x1] ss:$0 sm:$0xff] }
 0x4dd   :  { %2661 = vpow2.f32 %v789_v13 }
 0x4e6   :  { %v2660_v14 = vpop.eup %2659 }
 0x4e7   :  { %v791_v15 = vsel %vm731_vm2, %v2660_v14, 0.0 }
 0x4e8   :  { %792 = vadd.xlane.f32.xlu1 %v791_v15 }
 0x4ea   :  { %v2662_v17 = vpop.eup %2661 }
 0x4eb   :  { %v794_v18 = vsel %vm731_vm2, %v2662_v17, 0.0 }
 0x4ec   :  { %795 = vadd.xlane.f32.xlu1 %v794_v18 }
 0x4fd   :  { %802 = vrot.lane.b32.xlu1 %v2984_v55, %s2721_s15 }
 0x571   :  { %v793_v19 = vpop.xlane.xlu1 %792 }
 0x572   :  { %2663 = vrcp.f32 %v793_v19 }
 0x575   :  { %v796_v20 = vpop.xlane.xlu1 %795 }
 0x576   :  { %2665 = vrcp.f32 %v796_v20 }
 0x579   :  { %v803_v21 = vpop.permute.xlu1 %802 }
 0x57a   :  { %2423 = vmatpush3.bf16.msra.mxu1 %v803_v21 }
 0x57b   :  { %2428 = vmatprep.subr.bf16.mxu1 %v2715_v29 }
 0x57f   :  { %v2664_v22 = vpop.eup %2663 }
 0x580   :  { %v799_v24 = vmul.f32 %v2664_v22, %v2660_v14 }
 0x583   :  { %v2666_v23 = vpop.eup %2665 }
 0x584   :  { %v800_v25 = vmul.f32 %v2666_v23, %v2662_v17 }
 0x586   :  { %v801_v26 = vpack.c.bf16 %v800_v25, %v799_v24 }
 0x588   :  { %2425 = vmatmul.mubr.msk.bf16.vlgmr.msra.gmra.mxu1 %vm731_vm2, %v801_v26 }
 0x589   :  { %2430 = vmatprep.mubr.msk.bf16.mxu1 %vm2716_vm1, %v2715_v29  ;;  %2429 = vmatpush3.bf16.msra.mxu1 %v2627_v27 }
 0x58a   :  { %2434 = vmatprep.subr.bf16.mxu1 %v2715_v29 }
 0x648   :  { %v842_v28 = vpop.f32.mrf.mxu1 }
 0x64a   :  { %v2426_v30 = vpop.f32.mrf.mxu1 }
 0x64c   :  { %v845_v32 = vpop.f32.mrf.mxu1 }
 0x64d   :  { %v849_v33 = vpack.c.bf16 %v845_v32, %v842_v28 }
 0x64e   :  { %v2427_v34 = vpop.f32.mrf.mxu1 }
 0x64f   :  { %2431 = vmatmul.mubr.msk.bf16.vlgmr.msra.gmra.mxu1 %vm731_vm2, %v849_v33 }
 0x650   :  { %2435 = vmatpush3.bf16.xpose.msra.mxu1 %v914_v35  ;;  %2436 = vmatprep.mubr.msk.bf16.mxu1 %vm2716_vm1, %v2715_v29  ;;  %v2629_v35 = vld [vmem:[%s3317_s5 + $0x8] sm:$0xff]  }
 0x651   :  { %2440 = vmatprep.subr.bf16.mxu1 %v2715_v29 }
 0x657   :  { %2437 = vmatmul.mubr.msk.bf16.vlgmr.msra.gmra.mxu1 %vm731_vm2, %v907_v36  ;;  %v2630_v36 = vld [vmem:[%s3317_s5] sm:$0xff]  }
 0x658   :  { %2442 = vmatprep.mubr.msk.bf16.mxu1 %vm2716_vm1, %v2715_v29 }
 0x70f   :  { %v893_v37 = vpop.f32.mrf.mxu1 }
 0x710   :  { %v904_v13 = vadd.f32 %v2201_v12, %v893_v37 }
 0x711   :  { %v2432_v38 = vpop.f32.mrf.mxu1 }
 0x713   :  { %v896_v39 = vpop.f32.mrf.mxu1 }
 0x714   :  { %v905_v18 = vadd.f32 %v2201_v12, %v896_v39 }
 0x715   :  { %v2433_v40 = vpop.f32.mrf.mxu1 }
 0x717   :  { %v950_v41 = vpop.f32.mrf.mxu1 }
 0x718   :  { %v951_v42 = vadd.f32 %v950_v41, %v2998_v61 }
 0x719   :  { %v2438_v43 = vpop.f32.mrf.mxu1 }
 0x71a   :  { %v957_v44 = vsel %vm731_vm2, %v951_v42, -inf }
 0x71b   :  { %958 = vmax.xlane.f32.xlu0 %v957_v44  ;;  %v953_v45 = vpop.f32.mrf.mxu1 }
 0x71c   :  { %v954_v46 = vadd.f32 %v953_v45, %v3001_v1  ;;  %v2206_v45 = vld [vmem:[%s3314_s8 + $0x2] ss:$0 sm:$0xff] }
 0x71d   :  { %v2439_v47 = vpop.f32.mrf.mxu1 }
 0x71e   :  { %v960_v48 = vsel %vm731_vm2, %v954_v46, -inf }
 0x71f   :  { %961 = vmax.xlane.f32.xlu1 %v960_v48 }
 0x7a4   :  { %v959_v49 = vpop.xlane.xlu0 %958 }
 0x7a5   :  { %v963_v50 = vsub.f32 %v951_v42, %v959_v49  ;;  %v2207_v49 = vld [vmem:[%s3314_s8 + $0x3] ss:$0 sm:$0xff] }
 0x7a7   :  { %v965_v51 = vmul.f32 1.442695, %v963_v50 }
 0x7a8   :  { %v962_v52 = vpop.xlane.xlu1 %961 }
 0x7a9   :  { %2667 = vpow2.f32 %v965_v51  ;;  %v964_v53 = vsub.f32 %v954_v46, %v962_v52 }
 0x7ab   :  { %v967_v54 = vmul.f32 1.442695, %v964_v53 }
 0x7ad   :  { %2669 = vpow2.f32 %v967_v54  ;;  %v2631_v54 = vld [vmem:[%s3318_s6 + $0x38] sm:$0xff]  }
 0x7b6   :  { %v2668_v56 = vpop.eup %2667 }
 0x7b7   :  { %v969_v57 = vsel %vm731_vm2, %v2668_v56, 0.0 }
 0x7b8   :  { %970 = vadd.xlane.f32.xlu0 %v969_v57  ;;  %v2633_v57 = vld [vmem:[%s3318_s6 + $0x28] sm:$0xff]  }
 0x7ba   :  { %v2670_v58 = vpop.eup %2669 }
 0x7bb   :  { %v972_v59 = vsel %vm731_vm2, %v2670_v58, 0.0 }
 0x7bc   :  { %973 = vadd.xlane.f32.xlu0 %v972_v59  ;;  %v2635_v59 = vld [vmem:[%s3318_s6 + $0x18] sm:$0xff]  }
 0x7d2   :  { %980 = vrot.lane.b32.xlu0 %v2984_v55, %s2722_s18  ;;  %v2628_v55 = vld [vmem:[%s3316_s4 + $0x8] sm:$0xff]  }
 0x7d3   :  { %2447 = vmatpush3.bf16.msra.mxu0 %v2628_v55 }
 0x7d4   :  { %2460 = vmatprep.subr.bf16.mxu0 %v2715_v29 }
 0x841   :  { %v971_v60 = vpop.xlane.xlu0 %970 }
 0x842   :  { %2671 = vrcp.f32 %v971_v60  ;;  %v2636_v60 = vld [vmem:[%s3318_s6 + $0x10] sm:$0xff]  }
 0x845   :  { %v974_v62 = vpop.xlane.xlu0 %973 }
 0x846   :  { %2673 = vrcp.f32 %v974_v62  ;;  %v2637_v62 = vld [vmem:[%s3318_s6 + $0x8] sm:$0xff]  }
 0x849   :  { %v981_v63 = vpop.permute.xlu0 %980 }
 0x84a   :  { %2441 = vmatpush3.bf16.msra.mxu1 %v981_v63  ;;  %v2638_v63 = vld [vmem:[%s3318_s6] sm:$0xff]  }
 0x84b   :  { %2452 = vmatprep.subr.bf16.mxu1 %v2715_v29 }
 0x84f   :  { %v2672_v0 = vpop.eup %2671 }
 0x850   :  { %v977_v3 = vmul.f32 %v2672_v0, %v2668_v56  ;;  %v2632_v56 = vld [vmem:[%s3318_s6 + $0x30] sm:$0xff]   ;;  %v2208_v0 = vld [vmem:[%s3315_s9 + $0x2] ss:$0 sm:$0xff] }
 0x853   :  { %v2674_v2 = vpop.eup %2673 }
 0x854   :  { %v978_v4 = vmul.f32 %v2674_v2, %v2670_v58  ;;  %v2634_v58 = vld [vmem:[%s3318_s6 + $0x20] sm:$0xff]  }
 0x856   :  { %v979_v5 = vpack.c.bf16 %v978_v4, %v977_v3 }
 0x858   :  { %2443 = vmatmul.mubr.msk.bf16.vlgmr.msra.gmra.mxu1 %vm731_vm2, %v979_v5 }
 0x859   :  { %2456 = vmatprep.mubr.msk.bf16.mxu1 %vm2716_vm1, %v2715_v29  ;;  %2453 = vmatpush3.bf16.msra.mxu1 %v2629_v35 }
 0x85a   :  { %2454 = vmatprep.subr.bf16.mxu1 %v2715_v29 }
 0x85d   :  { %2455 = vmatpush3.bf16.msra.mxu1 %v2630_v36 }
 0x85e   :  { %2480 = vmatprep.subr.bf16.mxu1 %v2715_v29 }
 0x918   :  { %v1020_v6 = vpop.f32.mrf.mxu1 }
 0x91a   :  { %v2444_v7 = vpop.f32.mrf.mxu1 }
 0x91c   :  { %v1023_v8 = vpop.f32.mrf.mxu1 }
 0x91d   :  { %v1027_v9 = vpack.c.bf16 %v1023_v8, %v1020_v6 }
 0x91e   :  { %v2445_v10 = vpop.f32.mrf.mxu1 }
 0x91f   :  { %2449 = vmatmul.mubr.msk.bf16.vlgmr.msra.gmra.mxu0 %vm731_vm2, %v1027_v9 }
 0x920   :  { %2476 = vmatprep.mubr.msk.bf16.mxu0 %vm2716_vm1, %v2715_v29  ;;  %2461 = vmatpush3.bf16.msra.mxu0 %v2631_v54 }
 0x921   :  { %2462 = vmatprep.subr.bf16.mxu0 %v2715_v29 }
 0x924   :  { %2463 = vmatpush3.bf16.msra.mxu0 %v2632_v56 }
 0x925   :  { %2464 = vmatprep.subr.bf16.mxu0 %v2715_v29 }
 0x928   :  { %2465 = vmatpush3.bf16.msra.mxu0 %v2633_v57 }
 0x929   :  { %2466 = vmatprep.subr.bf16.mxu0 %v2715_v29 }
 0x92c   :  { %2467 = vmatpush3.bf16.msra.mxu0 %v2634_v58 }
 0x92d   :  { %2468 = vmatprep.subr.bf16.mxu0 %v2715_v29 }
 0x930   :  { %2469 = vmatpush3.bf16.msra.mxu0 %v2635_v59  ;;  %v2221_v59 = vld [vmem:[%s3314_s8 + $0x4] ss:$0 sm:$0xff] }
 0x931   :  { %2470 = vmatprep.subr.bf16.mxu0 %v2715_v29 }
 0x934   :  { %2471 = vmatpush3.bf16.msra.mxu0 %v2636_v60 }
 0x935   :  { %2472 = vmatprep.subr.bf16.mxu0 %v2715_v29 }
 0x938   :  { %2473 = vmatpush3.bf16.msra.mxu0 %v2637_v62 }
 0x939   :  { %2474 = vmatprep.subr.bf16.mxu0 %v2715_v29 }
 0x93c   :  { %2475 = vmatpush3.bf16.msra.mxu0 %v2638_v63 }
 0x93d   :  { %2506 = vmatprep.subr.bf16.mxu0 %v2715_v29 }
 0x9df   :  { %v1071_v14 = vpop.f32.mrf.mxu0 }
 0x9e0   :  { %v1078_v15 = vadd.f32 %v1071_v14, %v904_v13 }
 0x9e1   :  { %v2450_v17 = vpop.f32.mrf.mxu0 }
 0x9e2   :  { %v3049_v19 = vadd.f32 %v1078_v15, %v2946_v11 }
 0x9e3   :  { %v1074_v20 = vpop.f32.mrf.mxu0 }
 0x9e4   :  { %v1079_v21 = vadd.f32 %v1074_v20, %v905_v18  ;;  %v1084_v22 = vsel %vm616_vm0, %v3049_v19, 0.0 }
 0x9e5   :  { %1085 = vadd.xlane.f32.xlu1 %v1084_v22  ;;  %v2451_v23 = vpop.f32.mrf.mxu0 }
 0x9e6   :  { %v3054_v24 = vadd.f32 %v1079_v21, %v2950_v16 }
 0x9e8   :  { %v1087_v25 = vsel %vm616_vm0, %v3054_v24, 0.0 }
 0x9e9   :  { %1088 = vadd.xlane.f32.xlu1 %v1087_v25 }
 0xa6e   :  { %v1086_v26 = vpop.xlane.xlu1 %1085 }
 0xa6f   :  { %v1090_v27 = vmul.f32 0.03125, %v1086_v26 }
 0xa71   :  { %v1092_v28 = vsub.f32 %v3049_v19, %v1090_v27 }
 0xa72   :  { %v1089_v11 = vpop.xlane.xlu1 %1088 }
 0xa73   :  { %v1091_v30 = vmul.f32 0.03125, %v1089_v11  ;;  %v1094_v31 = vmul.f32 %v1092_v28, %v1092_v28 }
 0xa75   :  { %v1093_v32 = vsub.f32 %v3054_v24, %v1091_v30  ;;  %v1096_v33 = vsel %vm616_vm0, %v1094_v31, 0.0  ;;  %v2212_v30 = vld [vmem:[%s3315_s9 + $0x3] ss:$0 sm:$0xff] }
 0xa76   :  { %1097 = vadd.xlane.f32.xlu1 %v1096_v33 }
 0xa77   :  { %v1095_v34 = vmul.f32 %v1093_v32, %v1093_v32 }
 0xa79   :  { %v1099_v16 = vsel %vm616_vm0, %v1095_v34, 0.0 }
 0xa7a   :  { %1100 = vadd.xlane.f32.xlu1 %v1099_v16 }
 0xaff   :  { %v1098_v37 = vpop.xlane.xlu1 %1097 }
 0xb00   :  { %v1102_v38 = vmul.f32 0.03125, %v1098_v37 }
 0xb02   :  { %v1104_v39 = vadd.f32 1e-12, %v1102_v38 }
 0xb03   :  { %v1101_v40 = vpop.xlane.xlu1 %1100 }
 0xb04   :  { %2675 = vrsqrt.f32 %v1104_v39  ;;  %v1103_v41 = vmul.f32 0.03125, %v1101_v40 }
 0xb06   :  { %v1105_v42 = vadd.f32 1e-12, %v1103_v41 }
 0xb08   :  { %2677 = vrsqrt.f32 %v1105_v42 }
 0xb11   :  { %v2676_v43 = vpop.eup %2675 }
 0xb12   :  { %v1108_v44 = vmul.f32 %v2676_v43, %v1092_v28 }
 0xb14   :  { %v1114_v48 = vmul.f32 %v2206_v45, %v1108_v44 }
 0xb15   :  { %v2678_v46 = vpop.eup %2677 }
 0xb16   :  { %v1109_v47 = vmul.f32 %v2678_v46, %v1093_v32  ;;  %v1120_v51 = vadd.f32 %v2207_v49, %v1114_v48  ;;  %v2639_v48 = vld [vmem:[%s3313_s3 + $0x18] sm:$0xff]  }
 0xb18   :  { %v1115_v50 = vmul.f32 %v2206_v45, %v1109_v47 }
 0xb1a   :  { %v1121_v52 = vadd.f32 %v2207_v49, %v1115_v50  ;;  %v2640_v49 = vld [vmem:[%s3313_s3 + $0x10] sm:$0xff]  }
 0xb1c   :  { %v1122_v53 = vpack.c.bf16 %v1121_v52, %v1120_v51 }
 0xb1e   :  { %2457 = vmatmul.mubr.msk.bf16.vlgmr.msra.gmra.mxu1 %vm616_vm0, %v1122_v53 }
 0xb1f   :  { %2484 = vmatprep.mubr.msk.bf16.mxu1 %vm2716_vm1, %v2715_v29  ;;  %2481 = vmatpush3.bf16.msra.mxu1 %v2639_v48 }
 0xb20   :  { %2482 = vmatprep.subr.bf16.mxu1 %v2715_v29 }
 0xb23   :  { %2483 = vmatpush3.bf16.msra.mxu1 %v2640_v49 }
 0xb24   :  { %2488 = vmatprep.subr.bf16.mxu1 %v2715_v29 }
 0xbde   :  { %v1181_v2 = vpop.f32.mrf.mxu1 }
 0xbdf   :  { %v1182_v3 = vadd.f32 %v2208_v0, %v1181_v2 }
 0xbe0   :  { %v2458_v4 = vpop.f32.mrf.mxu1 }
 0xbe1   :  { %v1188_v5 = vmul.f32 %v1182_v3, %v1182_v3 }
 0xbe2   :  { %v1184_v55 = vpop.f32.mrf.mxu1 }
 0xbe3   :  { %v1190_v6 = vmul.f32 %v1188_v5, %v1182_v3  ;;  %v1185_v7 = vadd.f32 %v2208_v0, %v1184_v55  ;;  %v2222_v0 = vld [vmem:[%s3314_s8 + $0x5] ss:$0 sm:$0xff] }
 0xbe4   :  { %v2459_v8 = vpop.f32.mrf.mxu1 }
 0xbe5   :  { %v1192_v9 = vmul.f32 0.044715, %v1190_v6  ;;  %v1189_v10 = vmul.f32 %v1185_v7, %v1185_v7  ;;  %v2227_v6 = vld [vmem:[%s3315_s9 + $0x4] ss:$0 sm:$0xff] }
 0xbe7   :  { %v1194_v12 = vadd.f32 %v1192_v9, %v1182_v3  ;;  %v1191_v13 = vmul.f32 %v1189_v10, %v1185_v7 }
 0xbe9   :  { %v1196_v14 = vmul.f32 0.7978846, %v1194_v12  ;;  %v1193_v15 = vmul.f32 0.044715, %v1191_v13 }
 0xbeb   :  { %2679 = vtanh.f32 %v1196_v14  ;;  %v1195_v17 = vadd.f32 %v1193_v15, %v1185_v7 }
 0xbed   :  { %v1197_v18 = vmul.f32 0.7978846, %v1195_v17 }
 0xbef   :  { %2681 = vtanh.f32 %v1197_v18 }
 0xbf8   :  { %v2680_v20 = vpop.eup %2679 }
 0xbf9   :  { %v1200_v21 = vadd.f32 1.0, %v2680_v20 }
 0xbfb   :  { %v1202_v23 = vmul.f32 0.5, %v1200_v21 }
 0xbfc   :  { %v2682_v22 = vpop.eup %2681 }
 0xbfd   :  { %v1201_v25 = vadd.f32 1.0, %v2682_v22  ;;  %v1204_v27 = vmul.f32 %v1202_v23, %v1182_v3 }
 0xbff   :  { %v1203_v26 = vmul.f32 0.5, %v1201_v25 }
 0xc01   :  { %v1205_v28 = vmul.f32 %v1203_v26, %v1185_v7 }
 0xc03   :  { %v1206_v11 = vpack.c.bf16 %v1205_v28, %v1204_v27 }
 0xc05   :  { %2477 = vmatmul.mubr.bf16.vlgmr.msra.gmra.mxu0 %v1206_v11 }
 0xc06   :  { %2508 = vmatprep.mubr.msk.bf16.mxu0 %vm2716_vm1, %v2715_v29 }
 0xcc5   :  { %v1310_v31 = vpop.f32.mrf.mxu0 }
 0xcc6   :  { %v1311_v32 = vadd.f32 %v2212_v30, %v1310_v31 }
 0xcc7   :  { %v2478_v33 = vpop.f32.mrf.mxu0 }
 0xcc8   :  { %v3120_v34 = vadd.f32 %v1311_v32, %v3049_v19 }
 0xcc9   :  { %v1313_v16 = vpop.f32.mrf.mxu0 }
 0xcca   :  { %v1314_v35 = vadd.f32 %v2212_v30, %v1313_v16  ;;  %v1321_v36 = vsel %vm616_vm0, %v3120_v34, 0.0 }
 0xccb   :  { %1322 = vadd.xlane.f32.xlu1 %v1321_v36  ;;  %v2479_v37 = vpop.f32.mrf.mxu0 }
 0xccc   :  { %v3125_v38 = vadd.f32 %v1314_v35, %v3054_v24 }
 0xcce   :  { %v1324_v39 = vsel %vm616_vm0, %v3125_v38, 0.0 }
 0xccf   :  { %1325 = vadd.xlane.f32.xlu1 %v1324_v39 }
 0xd54   :  { %v1323_v40 = vpop.xlane.xlu1 %1322 }
 0xd55   :  { %v1327_v41 = vmul.f32 0.03125, %v1323_v40 }
 0xd57   :  { %v1329_v42 = vsub.f32 %v3120_v34, %v1327_v41 }
 0xd58   :  { %v1326_v19 = vpop.xlane.xlu1 %1325 }
 0xd59   :  { %v1328_v43 = vmul.f32 0.03125, %v1326_v19  ;;  %v1331_v44 = vmul.f32 %v1329_v42, %v1329_v42 }
 0xd5b   :  { %v1330_v45 = vsub.f32 %v3125_v38, %v1328_v43  ;;  %v1333_v46 = vsel %vm616_vm0, %v1331_v44, 0.0 }
 0xd5c   :  { %1334 = vadd.xlane.f32.xlu0 %v1333_v46 }
 0xd5d   :  { %v1332_v47 = vmul.f32 %v1330_v45, %v1330_v45 }
 0xd5f   :  { %v1336_v24 = vsel %vm616_vm0, %v1332_v47, 0.0 }
 0xd60   :  { %1337 = vadd.xlane.f32.xlu1 %v1336_v24 }
 0xde5   :  { %v1335_v50 = vpop.xlane.xlu0 %1334 }
 0xde6   :  { %v1339_v51 = vmul.f32 0.03125, %v1335_v50 }
 0xde8   :  { %v1341_v52 = vadd.f32 1e-12, %v1339_v51 }
 0xde9   :  { %v1338_v53 = vpop.xlane.xlu1 %1337 }
 0xdea   :  { %2683 = vrsqrt.f32 %v1341_v52  ;;  %v1340_v54 = vmul.f32 0.03125, %v1338_v53 }
 0xdec   :  { %v1342_v56 = vadd.f32 1e-12, %v1340_v54 }
 0xdee   :  { %2685 = vrsqrt.f32 %v1342_v56 }
 0xdf7   :  { %v2684_v57 = vpop.eup %2683 }
 0xdf8   :  { %v1345_v58 = vmul.f32 %v2684_v57, %v1329_v42 }
 0xdfa   :  { %v1351_v63 = vmul.f32 %v2221_v59, %v1345_v58 }
 0xdfb   :  { %v2686_v60 = vpop.eup %2685 }
 0xdfc   :  { %v1346_v62 = vmul.f32 %v2686_v60, %v1330_v45  ;;  %v1357_v3 = vadd.f32 %v2222_v0, %v1351_v63 }
 0xdfe   :  { %v1352_v2 = vmul.f32 %v2221_v59, %v1346_v62 }
 0xe00   :  { %v1358_v4 = vadd.f32 %v2222_v0, %v1352_v2  ;;  %v2641_v2 = vld [vmem:[%s3316_s4 + $0x10] sm:$0xff]  }
 0xe02   :  { %v1359_v5 = vpack.c.bf16 %v1358_v4, %v1357_v3 }
 0xe04   :  { %2485 = vmatmul.mubr.msk.bf16.vlgmr.msra.gmra.mxu1 %vm616_vm0, %v1359_v5 }
 0xe05   :  { %2490 = vmatprep.mubr.msk.bf16.mxu1 %vm2716_vm1, %v2715_v29 }
 0xec4   :  { %v1419_v55 = vpop.f32.mrf.mxu1 }
 0xec5   :  { %v1420_v9 = vadd.f32 %v2227_v6, %v1419_v55 }
 0xec6   :  { %v2486_v7 = vpop.f32.mrf.mxu1 }
 0xec8   :  { %v1422_v8 = vpop.f32.mrf.mxu1 }
 0xec9   :  { %v1423_v10 = vadd.f32 %v2227_v6, %v1422_v8 }
 0xeca   :  { %v2487_v12 = vpop.f32.mrf.mxu1 }
 0xecb   :  { %v3153_v13 = vpack.c.bf16 %v1423_v10, %v1420_v9 }
 0xecd   :  { %1434 = vrot.lane.b32.xlu1 %v3153_v13, %s2717_s12 }
 0xed1   :  { %1612 = vrot.lane.b32.xlu1 %v3153_v13, %s2718_s13 }
 0xed5   :  { %1610 = vrot.lane.b32.xlu1 %v3153_v13, %s2719_s14 }
 0xf3f   :  { %v1435_v14 = vpop.permute.xlu1 %1434 }
 0xf40   :  { %v1440_v15 = vsel %vm731_vm2, %v1435_v14, 0 }
 0xf41   :  { %2489 = vmatpush3.bf16.xpose.msra.mxu1 %v1440_v15 }
 0xf42   :  { %2494 = vmatprep.subr.bf16.mxu1 %v2715_v29 }
 0xf43   :  { %v1613_v17 = vpop.permute.xlu1 %1612 }
 0xf44   :  { %v1618_v18 = vsel %vm731_vm2, %v1613_v17, 0  ;;  %v2642_v17 = vld [vmem:[%s3316_s4 + $0x18] sm:$0xff]  }
 0xf45   :  { %2507 = vmatpush3.bf16.xpose.msra.mxu0 %v1618_v18 }
 0xf46   :  { %2518 = vmatprep.subr.bf16.mxu0 %v2715_v29 }
 0xf47   :  { %v1611_v20 = vpop.permute.xlu1 %1610 }
 0xf48   :  { %2491 = vmatmul.mubr.msk.bf16.vlgmr.msra.gmra.mxu1 %vm731_vm2, %v3153_v13 }
 0xf49   :  { %2496 = vmatprep.mubr.msk.bf16.mxu1 %vm2716_vm1, %v2715_v29 }
 0xf4c   :  { %2509 = vmatmul.mubr.msk.bf16.vlgmr.msra.gmra.mxu0 %vm731_vm2, %v1611_v20 }
 0xf4d   :  { %2520 = vmatprep.mubr.msk.bf16.mxu0 %vm2716_vm1, %v2715_v29  ;;  %2519 = vmatpush3.bf16.msra.mxu0 %v2642_v17 }
 0xf4e   :  { %2532 = vmatprep.subr.bf16.mxu0 %v2715_v29 }
0x1008   :  { %v1476_v21 = vpop.f32.mrf.mxu1 }
0x1009   :  { %v1477_v22 = vadd.f32 %v1476_v21, %v2998_v61 }
0x100a   :  { %v2492_v23 = vpop.f32.mrf.mxu1 }
0x100b   :  { %v1483_v25 = vsel %vm731_vm2, %v1477_v22, -inf }
0x100c   :  { %v1654_v26 = vpop.f32.mrf.mxu0  ;;  %1484 = vmax.xlane.f32.xlu0 %v1483_v25  ;;  %v1479_v27 = vpop.f32.mrf.mxu1 }
0x100d   :  { %v1480_v28 = vadd.f32 %v1479_v27, %v3001_v1 }
0x100e   :  { %v2493_v11 = vpop.f32.mrf.mxu1  ;;  %v2510_v30 = vpop.f32.mrf.mxu0 }
0x100f   :  { %v1486_v31 = vsel %vm731_vm2, %v1480_v28, -inf  ;;  %v2239_v11 = vld [vmem:[%s3315_s9 + $0x5] ss:$0 sm:$0xff] }
0x1010   :  { %v1657_v32 = vpop.f32.mrf.mxu0  ;;  %1487 = vmax.xlane.f32.xlu1 %v1486_v31 }
0x1011   :  { %v1658_v33 = vadd.f32 %v1657_v32, %v3001_v1  ;;  %v1655_v1 = vadd.f32 %v1654_v26, %v2998_v61 }
0x1012   :  { %v2511_v16 = vpop.f32.mrf.mxu0 }
0x1013   :  { %v1664_v35 = vsel %vm731_vm2, %v1658_v33, -inf  ;;  %v1661_v46 = vsel %vm731_vm2, %v1655_v1, -inf }
0x1014   :  { %1665 = vmax.xlane.f32.xlu1 %v1664_v35 }
0x1095   :  { %v1485_v36 = vpop.xlane.xlu0 %1484 }
0x1096   :  { %v1489_v37 = vsub.f32 %v1477_v22, %v1485_v36 }
0x1098   :  { %v1491_v39 = vmul.f32 1.442695, %v1489_v37 }
0x1099   :  { %v1488_v40 = vpop.xlane.xlu1 %1487 }
0x109a   :  { %2687 = vpow2.f32 %v1491_v39  ;;  %v1490_v41 = vsub.f32 %v1480_v28, %v1488_v40 }
0x109c   :  { %v1493_v42 = vmul.f32 1.442695, %v1490_v41 }
0x109d   :  { %v1666_v61 = vpop.xlane.xlu1 %1665 }
0x109e   :  { %2689 = vpow2.f32 %v1493_v42  ;;  %v1668_v54 = vsub.f32 %v1658_v33, %v1666_v61 }
0x10a0   :  { %v1671_v58 = vmul.f32 1.442695, %v1668_v54 }
0x10a7   :  { %v2688_v19 = vpop.eup %2687 }
0x10a8   :  { %v1495_v43 = vsel %vm731_vm2, %v2688_v19, 0.0 }
0x10a9   :  { %1496 = vadd.xlane.f32.xlu0 %v1495_v43 }
0x10ab   :  { %v2690_v44 = vpop.eup %2689 }
0x10ac   :  { %v1498_v45 = vsel %vm731_vm2, %v2690_v44, 0.0 }
0x10ad   :  { %1499 = vadd.xlane.f32.xlu0 %v1498_v45 }
0x10c3   :  { %1506 = vrot.lane.b32.xlu0 %v3153_v13, %s2721_s15 }
0x10e2   :  { %1662 = vmax.xlane.f32.xlu0 %v1661_v46 }
0x1132   :  { %v1497_v47 = vpop.xlane.xlu0 %1496 }
0x1133   :  { %2691 = vrcp.f32 %v1497_v47 }
0x1136   :  { %v1500_v24 = vpop.xlane.xlu0 %1499 }
0x1137   :  { %2693 = vrcp.f32 %v1500_v24 }
0x113a   :  { %v1507_v48 = vpop.permute.xlu0 %1506 }
0x113b   :  { %2495 = vmatpush3.bf16.msra.mxu1 %v1507_v48  ;;  %v2643_v48 = vld [vmem:[%s3317_s5 + $0x18] sm:$0xff]  }
0x113c   :  { %2500 = vmatprep.subr.bf16.mxu1 %v2715_v29 }
0x1140   :  { %v2692_v49 = vpop.eup %2691 }
0x1141   :  { %v1503_v51 = vmul.f32 %v2692_v49, %v2688_v19  ;;  %v2644_v49 = vld [vmem:[%s3317_s5 + $0x10] sm:$0xff]  }
0x1144   :  { %v2694_v50 = vpop.eup %2693 }
0x1145   :  { %v1504_v52 = vmul.f32 %v2694_v50, %v2690_v44 }
0x1147   :  { %v1505_v53 = vpack.c.bf16 %v1504_v52, %v1503_v51 }
0x1149   :  { %2497 = vmatmul.mubr.msk.bf16.vlgmr.msra.gmra.mxu1 %vm731_vm2, %v1505_v53 }
0x114a   :  { %2502 = vmatprep.mubr.msk.bf16.mxu1 %vm2716_vm1, %v2715_v29  ;;  %2501 = vmatpush3.bf16.msra.mxu1 %v2641_v2 }
0x114b   :  { %2512 = vmatprep.subr.bf16.mxu1 %v2715_v29 }
0x116b   :  { %v1663_v56 = vpop.xlane.xlu0 %1662 }
0x116c   :  { %v1667_v57 = vsub.f32 %v1655_v1, %v1663_v56 }
0x116e   :  { %v1669_v59 = vmul.f32 1.442695, %v1667_v57 }
0x1170   :  { %2695 = vpow2.f32 %v1669_v59 }
0x1171   :  { %2697 = vpow2.f32 %v1671_v58  ;;  %v2244_v58 = vld [vmem:[%s3314_s8 + $0x6] ss:$0 sm:$0xff] }
0x117d   :  { %v2696_v60 = vpop.eup %2695 }
0x117e   :  { %v1673_v62 = vsel %vm731_vm2, %v2696_v60, 0.0  ;;  %v2698_v63 = vpop.eup %2697 }
0x117f   :  { %1674 = vadd.xlane.f32.xlu1 %v1673_v62  ;;  %v1676_v0 = vsel %vm731_vm2, %v2698_v63, 0.0 }
0x1183   :  { %1677 = vadd.xlane.f32.xlu1 %v1676_v0 }
0x1194   :  { %1684 = vrot.lane.b32.xlu1 %v3153_v13, %s2722_s18 }
0x1208   :  { %v1675_v3 = vpop.xlane.xlu1 %1674 }
0x1209   :  { %v1546_v4 = vpop.f32.mrf.mxu1  ;;  %2699 = vrcp.f32 %v1675_v3 }
0x120b   :  { %v2498_v5 = vpop.f32.mrf.mxu1 }
0x120c   :  { %v1678_v55 = vpop.xlane.xlu1 %1677  ;;  %v2645_v5 = vld [vmem:[%s3318_s6 + $0x78] sm:$0xff]  }
0x120d   :  { %2701 = vrcp.f32 %v1678_v55  ;;  %v1549_v6 = vpop.f32.mrf.mxu1  ;;  %v2646_v55 = vld [vmem:[%s3318_s6 + $0x70] sm:$0xff]  }
0x120e   :  { %v1553_v7 = vpack.c.bf16 %v1549_v6, %v1546_v4  ;;  %v2647_v6 = vld [vmem:[%s3318_s6 + $0x68] sm:$0xff]  }
0x120f   :  { %v2499_v8 = vpop.f32.mrf.mxu1 }
0x1210   :  { %v1685_v9 = vpop.permute.xlu1 %1684  ;;  %2503 = vmatmul.mubr.msk.bf16.vlgmr.msra.gmra.mxu1 %vm731_vm2, %v1553_v7  ;;  %v2648_v7 = vld [vmem:[%s3318_s6 + $0x60] sm:$0xff]   ;;  %v2649_v8 = vld [vmem:[%s3318_s6 + $0x58] sm:$0xff]  }
0x1211   :  { %2513 = vmatpush3.bf16.msra.mxu1 %v1685_v9  ;;  %2514 = vmatprep.mubr.msk.bf16.mxu1 %vm2716_vm1, %v2715_v29  ;;  %v2650_v9 = vld [vmem:[%s3318_s6 + $0x50] sm:$0xff]  }
0x1212   :  { %2524 = vmatprep.subr.bf16.mxu1 %v2715_v29 }
0x1216   :  { %v2700_v10 = vpop.eup %2699 }
0x1217   :  { %v1681_v13 = vmul.f32 %v2700_v10, %v2696_v60  ;;  %v2651_v10 = vld [vmem:[%s3318_s6 + $0x48] sm:$0xff]  }
0x121a   :  { %v2702_v12 = vpop.eup %2701 }
0x121b   :  { %v1682_v14 = vmul.f32 %v2702_v12, %v2698_v63  ;;  %v2245_v63 = vld [vmem:[%s3314_s8 + $0x7] ss:$0 sm:$0xff] }
0x121c   :  { %v2652_v12 = vld [vmem:[%s3318_s6 + $0x40] sm:$0xff]  }
0x121d   :  { %v1683_v15 = vpack.c.bf16 %v1682_v14, %v1681_v13  ;;  %v2250_v13 = vld [vmem:[%s3315_s9 + $0x6] ss:$0 sm:$0xff] }
0x121f   :  { %2515 = vmatmul.mubr.msk.bf16.vlgmr.msra.gmra.mxu1 %vm731_vm2, %v1683_v15 }
0x1220   :  { %2528 = vmatprep.mubr.msk.bf16.mxu1 %vm2716_vm1, %v2715_v29  ;;  %2525 = vmatpush3.bf16.msra.mxu1 %v2643_v48 }
0x1221   :  { %2526 = vmatprep.subr.bf16.mxu1 %v2715_v29 }
0x1224   :  { %2527 = vmatpush3.bf16.msra.mxu1 %v2644_v49 }
0x1225   :  { %2552 = vmatprep.subr.bf16.mxu1 %v2715_v29 }
0x12d0   :  { %v1597_v18 = vpop.f32.mrf.mxu1 }
0x12d1   :  { %v1608_v30 = vadd.f32 %v2239_v11, %v1597_v18 }
0x12d2   :  { %v2504_v20 = vpop.f32.mrf.mxu1 }
0x12d4   :  { %v1600_v21 = vpop.f32.mrf.mxu1 }
0x12d5   :  { %v1609_v16 = vadd.f32 %v2239_v11, %v1600_v21 }
0x12d6   :  { %v2505_v22 = vpop.f32.mrf.mxu1 }
0x12df   :  { %v1724_v23 = vpop.f32.mrf.mxu1 }
0x12e1   :  { %v2516_v25 = vpop.f32.mrf.mxu1 }
0x12e3   :  { %v1727_v26 = vpop.f32.mrf.mxu1 }
0x12e4   :  { %v1731_v27 = vpack.c.bf16 %v1727_v26, %v1724_v23 }
0x12e5   :  { %v2517_v28 = vpop.f32.mrf.mxu1 }
0x12e6   :  { %2521 = vmatmul.mubr.msk.bf16.vlgmr.msra.gmra.mxu0 %vm731_vm2, %v1731_v27 }
0x12e7   :  { %2548 = vmatprep.mubr.msk.bf16.mxu0 %vm2716_vm1, %v2715_v29  ;;  %2533 = vmatpush3.bf16.msra.mxu0 %v2645_v5 }
0x12e8   :  { %2534 = vmatprep.subr.bf16.mxu0 %v2715_v29 }
0x12eb   :  { %2535 = vmatpush3.bf16.msra.mxu0 %v2646_v55 }
0x12ec   :  { %2536 = vmatprep.subr.bf16.mxu0 %v2715_v29 }
0x12ef   :  { %2537 = vmatpush3.bf16.msra.mxu0 %v2647_v6  ;;  %v2279_v6 = vld [vmem:[%s3314_s8 + $0x8] ss:$0 sm:$0xff] }
0x12f0   :  { %2538 = vmatprep.subr.bf16.mxu0 %v2715_v29 }
0x12f3   :  { %2539 = vmatpush3.bf16.msra.mxu0 %v2648_v7 }
0x12f4   :  { %2540 = vmatprep.subr.bf16.mxu0 %v2715_v29 }
0x12f7   :  { %2541 = vmatpush3.bf16.msra.mxu0 %v2649_v8 }
0x12f8   :  { %2542 = vmatprep.subr.bf16.mxu0 %v2715_v29 }
0x12fb   :  { %2543 = vmatpush3.bf16.msra.mxu0 %v2650_v9 }
0x12fc   :  { %2544 = vmatprep.subr.bf16.mxu0 %v2715_v29 }
0x12ff   :  { %2545 = vmatpush3.bf16.msra.mxu0 %v2651_v10 }
0x1300   :  { %2546 = vmatprep.subr.bf16.mxu0 %v2715_v29 }
0x1303   :  { %2547 = vmatpush3.bf16.msra.mxu0 %v2652_v12 }
0x13a6   :  { %v1775_v31 = vpop.f32.mrf.mxu0 }
0x13a7   :  { %v1782_v32 = vadd.f32 %v1775_v31, %v1608_v30 }
0x13a8   :  { %v2522_v33 = vpop.f32.mrf.mxu0 }
0x13a9   :  { %v3214_v35 = vadd.f32 %v1782_v32, %v3120_v34 }
0x13aa   :  { %v1778_v36 = vpop.f32.mrf.mxu0 }
0x13ab   :  { %v1783_v37 = vadd.f32 %v1778_v36, %v1609_v16  ;;  %v1788_v39 = vsel %vm616_vm0, %v3214_v35, 0.0 }
0x13ac   :  { %1789 = vadd.xlane.f32.xlu0 %v1788_v39  ;;  %v2523_v40 = vpop.f32.mrf.mxu0 }
0x13ad   :  { %v3219_v41 = vadd.f32 %v1783_v37, %v3125_v38 }
0x13af   :  { %v1791_v42 = vsel %vm616_vm0, %v3219_v41, 0.0 }
0x13b0   :  { %1792 = vadd.xlane.f32.xlu1 %v1791_v42 }
0x1435   :  { %v1790_v19 = vpop.xlane.xlu0 %1789 }
0x1436   :  { %v1794_v43 = vmul.f32 0.03125, %v1790_v19 }
0x1438   :  { %v1796_v44 = vsub.f32 %v3214_v35, %v1794_v43 }
0x1439   :  { %v1793_v34 = vpop.xlane.xlu1 %1792 }
0x143a   :  { %v1795_v45 = vmul.f32 0.03125, %v1793_v34  ;;  %v1798_v1 = vmul.f32 %v1796_v44, %v1796_v44 }
0x143c   :  { %v1797_v46 = vsub.f32 %v3219_v41, %v1795_v45  ;;  %v1800_v47 = vsel %vm616_vm0, %v1798_v1, 0.0 }
0x143d   :  { %1801 = vadd.xlane.f32.xlu0 %v1800_v47 }
0x143e   :  { %v1799_v24 = vmul.f32 %v1797_v46, %v1797_v46 }
0x1440   :  { %v1803_v38 = vsel %vm616_vm0, %v1799_v24, 0.0 }
0x1441   :  { %1804 = vadd.xlane.f32.xlu0 %v1803_v38 }
0x14c6   :  { %v1802_v50 = vpop.xlane.xlu0 %1801 }
0x14c7   :  { %v1806_v51 = vmul.f32 0.03125, %v1802_v50 }
0x14c9   :  { %v1808_v52 = vadd.f32 1e-12, %v1806_v51 }
0x14ca   :  { %v1805_v53 = vpop.xlane.xlu0 %1804 }
0x14cb   :  { %2703 = vrsqrt.f32 %v1808_v52  ;;  %v1807_v61 = vmul.f32 0.03125, %v1805_v53 }
0x14cd   :  { %v1809_v54 = vadd.f32 1e-12, %v1807_v61 }
0x14cf   :  { %2705 = vrsqrt.f32 %v1809_v54 }
0x14d8   :  { %v2704_v56 = vpop.eup %2703 }
0x14d9   :  { %v1812_v57 = vmul.f32 %v2704_v56, %v1796_v44  ;;  %v2270_v44 = vld [vmem:[%s3315_s9 + $0x7] ss:$0 sm:$0xff] }
0x14db   :  { %v1818_v62 = vmul.f32 %v2244_v58, %v1812_v57 }
0x14dc   :  { %v2706_v59 = vpop.eup %2705 }
0x14dd   :  { %v1813_v60 = vmul.f32 %v2706_v59, %v1797_v46  ;;  %v1824_v2 = vadd.f32 %v2245_v63, %v1818_v62 }
0x14df   :  { %v1819_v0 = vmul.f32 %v2244_v58, %v1813_v60  ;;  %v2654_v60 = vld [vmem:[%s3319_s7] sm:$0xff]  }
0x14e1   :  { %v1825_v3 = vadd.f32 %v2245_v63, %v1819_v0 }
0x14e3   :  { %v1826_v4 = vpack.c.bf16 %v1825_v3, %v1824_v2 }
0x14e5   :  { %2529 = vmatmul.mubr.msk.bf16.vlgmr.msra.gmra.mxu1 %vm616_vm0, %v1826_v4 }
0x14e6   :  { %2556 = vmatprep.mubr.msk.bf16.mxu1 %vm2716_vm1, %v2715_v29 }
0x15a5   :  { %v1886_v14 = vpop.f32.mrf.mxu1 }
0x15a6   :  { %v1887_v15 = vadd.f32 %v2250_v13, %v1886_v14 }
0x15a7   :  { %v2530_v17 = vpop.f32.mrf.mxu1 }
0x15a8   :  { %v1893_v18 = vmul.f32 %v1887_v15, %v1887_v15 }
0x15a9   :  { %v1889_v20 = vpop.f32.mrf.mxu1 }
0x15aa   :  { %v1895_v21 = vmul.f32 %v1893_v18, %v1887_v15  ;;  %v1890_v22 = vadd.f32 %v2250_v13, %v1889_v20 }
0x15ab   :  { %v2531_v23 = vpop.f32.mrf.mxu1 }
0x15ac   :  { %v1897_v25 = vmul.f32 0.044715, %v1895_v21  ;;  %v1894_v26 = vmul.f32 %v1890_v22, %v1890_v22 }
0x15ae   :  { %v1899_v27 = vadd.f32 %v1897_v25, %v1887_v15  ;;  %v1896_v28 = vmul.f32 %v1894_v26, %v1890_v22 }
0x15b0   :  { %v1901_v11 = vmul.f32 0.7978846, %v1899_v27  ;;  %v1898_v30 = vmul.f32 0.044715, %v1896_v28 }
0x15b2   :  { %2707 = vtanh.f32 %v1901_v11  ;;  %v1900_v31 = vadd.f32 %v1898_v30, %v1890_v22 }
0x15b4   :  { %v1902_v32 = vmul.f32 0.7978846, %v1900_v31 }
0x15b6   :  { %2709 = vtanh.f32 %v1902_v32 }
0x15bf   :  { %v2708_v33 = vpop.eup %2707 }
0x15c0   :  { %v1905_v16 = vadd.f32 1.0, %v2708_v33 }
0x15c2   :  { %v1907_v37 = vmul.f32 0.5, %v1905_v16 }
0x15c3   :  { %v2710_v36 = vpop.eup %2709 }
0x15c4   :  { %v1906_v39 = vadd.f32 1.0, %v2710_v36  ;;  %v1909_v42 = vmul.f32 %v1907_v37, %v1887_v15  ;;  %v2281_v15 = vld [vmem:[%s3315_s9 + $0x8] ss:$0 sm:$0xff] }
0x15c6   :  { %v1908_v40 = vmul.f32 0.5, %v1906_v39 }
0x15c8   :  { %v1910_v19 = vmul.f32 %v1908_v40, %v1890_v22 }
0x15ca   :  { %v1911_v43 = vpack.c.bf16 %v1910_v19, %v1909_v42 }
0x15cc   :  { %2549 = vmatmul.mubr.bf16.vlgmr.msra.gmra.mxu0 %v1911_v43 }
0x168c   :  { %v2016_v34 = vpop.f32.mrf.mxu0 }
0x168d   :  { %v2017_v45 = vadd.f32 %v2270_v44, %v2016_v34 }
0x168e   :  { %v2550_v1 = vpop.f32.mrf.mxu0 }
0x168f   :  { %v2023_v46 = vadd.f32 %v2017_v45, %v3214_v35 }
0x1690   :  { %v2019_v47 = vpop.f32.mrf.mxu0 }
0x1691   :  { %v2020_v24 = vadd.f32 %v2270_v44, %v2019_v47  ;;  %v2027_v38 = vsel %vm616_vm0, %v2023_v46, 0.0 }
0x1692   :  { %2028 = vadd.xlane.f32.xlu0 %v2027_v38  ;;  %v2551_v48 = vpop.f32.mrf.mxu0 }
0x1693   :  { %v2024_v49 = vadd.f32 %v2020_v24, %v3219_v41  ;;  %v2653_v41 = vld [vmem:[%s3319_s7 + $0x8] sm:$0xff]  }
0x1694   :  { %2553 = vmatpush3.bf16.msra.mxu1 %v2653_v41 }
0x1695   :  { %v2030_v50 = vsel %vm616_vm0, %v2024_v49, 0.0  ;;  %2554 = vmatprep.subr.bf16.mxu1 %v2715_v29  ;;  %v2280_v29 = vld [vmem:[%s3314_s8 + $0x9] ss:$0 sm:$0xff] }
0x1696   :  { %2031 = vadd.xlane.f32.xlu0 %v2030_v50 }
0x1698   :  { %2555 = vmatpush3.bf16.msra.mxu1 %v2654_v60 }
0x171b   :  { %v2029_v51 = vpop.xlane.xlu0 %2028 }
0x171c   :  { %v2033_v52 = vmul.f32 0.03125, %v2029_v51 }
0x171e   :  { %v2035_v53 = vsub.f32 %v2023_v46, %v2033_v52 }
0x171f   :  { %v2032_v61 = vpop.xlane.xlu0 %2031 }
0x1720   :  { %v2034_v54 = vmul.f32 0.03125, %v2032_v61  ;;  %v2037_v56 = vmul.f32 %v2035_v53, %v2035_v53 }
0x1722   :  { %v2036_v57 = vsub.f32 %v2024_v49, %v2034_v54  ;;  %v2039_v35 = vsel %vm616_vm0, %v2037_v56, 0.0 }
0x1723   :  { %2040 = vadd.xlane.f32.xlu0 %v2039_v35 }
0x1724   :  { %v2038_v58 = vmul.f32 %v2036_v57, %v2036_v57 }
0x1726   :  { %v2042_v59 = vsel %vm616_vm0, %v2038_v58, 0.0 }
0x1727   :  { %2043 = vadd.xlane.f32.xlu0 %v2042_v59 }
0x17ac   :  { %v2041_v62 = vpop.xlane.xlu0 %2040 }
0x17ad   :  { %v2045_v63 = vmul.f32 0.03125, %v2041_v62 }
0x17af   :  { %v2047_v0 = vadd.f32 1e-12, %v2045_v63 }
0x17b0   :  { %v2044_v2 = vpop.xlane.xlu0 %2043 }
0x17b1   :  { %2711 = vrsqrt.f32 %v2047_v0  ;;  %v2046_v3 = vmul.f32 0.03125, %v2044_v2 }
0x17b3   :  { %v2048_v4 = vadd.f32 1e-12, %v2046_v3 }
0x17b5   :  { %2713 = vrsqrt.f32 %v2048_v4 }
0x17be   :  { %v2712_v5 = vpop.eup %2711 }
0x17bf   :  { %v2051_v55 = vmul.f32 %v2712_v5, %v2035_v53 }
0x17c1   :  { %v2057_v9 = vmul.f32 %v2279_v6, %v2051_v55 }
0x17c2   :  { %v2714_v7 = vpop.eup %2713 }
0x17c3   :  { %v2052_v8 = vmul.f32 %v2714_v7, %v2036_v57  ;;  %v2063_v12 = vadd.f32 %v2280_v29, %v2057_v9 }
0x17c5   :  { %v2058_v10 = vmul.f32 %v2279_v6, %v2052_v8 }
0x17c7   :  { %v2064_v13 = vadd.f32 %v2280_v29, %v2058_v10 }
0x17c9   :  { %v2065_v14 = vpack.c.bf16 %v2064_v13, %v2063_v12 }
0x17cb   :  { %2557 = vmatmul.mubr.msk.bf16.vlgmr.msra.gmra.mxu1 %vm616_vm0, %v2065_v14 }
0x188b   :  { %v2124_v17 = vpop.f32.mrf.mxu1 }
0x188c   :  { %v2125_v18 = vadd.f32 %v2281_v15, %v2124_v17 }
0x188d   :  { %v2558_v20 = vpop.f32.mrf.mxu1 }
0x188e   :  { %2131 = vst [vmem:[%s3320_s10] sm:$0xff] %v2125_v18 }
0x188f   :  { %v2127_v21 = vpop.f32.mrf.mxu1 }
0x1890   :  { %v2128_v22 = vadd.f32 %v2281_v15, %v2127_v21 }
0x1891   :  { %v2559_v23 = vpop.f32.mrf.mxu1 }
0x1892   :  { %2132 = vst [vmem:[%s3320_s10 + $0x8] sm:$0xff] %v2128_v22 }

</bundles_post_ra>
